<compile_context>
chip_gen: v7x
topology: tpu7x:2x2x1
jax: 0.10.0
libtpu: 0.0.40
codegen_flags: <defaults>
</compile_context>

<pallas_src>
import inspect

import jax
import jax.numpy as jnp
from jax.experimental import pallas as pl
from jax.experimental.pallas import tpu as pltpu


def _round_up(n, m):
    return (n + m - 1) // m * m


_HAS_BUFFERED = (
    hasattr(pl, "Buffered")
    and "pipeline_mode" in inspect.signature(pl.BlockSpec).parameters
)


def _make_kernel(lorder, t_pad, t_valid):
    def fsmn_kernel(x_ref, w1_ref, b1_ref, w2_ref, cw_ref, o_ref):
        x_in = x_ref[...]                                 # (RT, Dp) native dtype
        xf = x_in.astype(jnp.float32)                     # exact residual add
        xb = x_in.astype(jnp.bfloat16)

        # Linear (bf16 MXU, f32 accumulate) + bias + ReLU in f32.
        f1 = jnp.dot(xb, w1_ref[...], preferred_element_type=jnp.float32)
        f1 = jnp.maximum(f1 + b1_ref[...], 0.0)

        # Projection (no bias), bf16 MXU, f32 accumulate.
        p1 = jnp.dot(f1.astype(jnp.bfloat16), w2_ref[...],
                     preferred_element_type=jnp.float32)  # (RT, Dp) f32

        rt = p1.shape[0]
        if lorder > 1:
            # Zero p1's time-padded tail rows ONCE.  Because t_pad >= t_valid +
            # lorder - 1, every circular roll below can only wrap into these
            # zeroed rows, so no per-tap mask is needed.
            pos = jax.lax.broadcasted_iota(jnp.int32, (rt, 1), 0) % t_pad
            p1 = jnp.where(pos < t_valid, p1, 0.0)

        # Causal depthwise FIR over time:
        #   conv[t, c] = sum_{d=0}^{lorder-1} cw[d, c] * p1[t-d, c], zero if t-d<0.
        conv = p1 * cw_ref[0:1, :]                        # tap d=0: no roll
        for d in range(1, lorder):
            shifted = pltpu.roll(p1, shift=d, axis=0)     # XLU: row t <- p1[t-d mod RT]
            conv = conv + shifted * cw_ref[d:d + 1, :]
        # TODO(synk): for lorder >~ 8 replace per-tap roll with a
        # (RT + lorder - 1, Dp) VMEM scratch + static slices (plain vld + FMA).

        o_ref[...] = (xf + p1 + conv).astype(o_ref.dtype)

    return fsmn_kernel


def uni_deep_fsmn(x, w_lin, b_lin, w_proj, w_conv, lorder, *, target_rows=1024):
    """x: (B, T, Din), f32 or bf16.
       w_lin:  (H, Din)              -> nn.Linear(input_dim, hidden).weight
       b_lin:  (H,)                  -> nn.Linear bias
       w_proj: (Dout, H)             -> nn.Linear(hidden, output_dim, bias=False).weight
       w_conv: (Dout, 1, lorder, 1)  -> depthwise Conv2d weight
    """
    B, T, Din = x.shape
    H = w_lin.shape[0]
    Dout = w_proj.shape[0]
    assert Din == Dout, "residual add requires input_dim == output_dim"

    f32, bf16 = jnp.float32, jnp.bfloat16
    in_dtype = x.dtype
    in_bytes = jnp.dtype(in_dtype).itemsize

    # ---- padded sizes --------------------------------------------------------
    # Time is padded so that T_pad >= T + lorder - 1: the extra (zeroed) rows
    # absorb all circular-roll wrap in the conv, removing per-tap masks.
    T_pad = _round_up(T + lorder - 1, 8)
    D_pad = _round_up(Dout, 128)     # lane-dense features -> unmasked stores
    H_pad = _round_up(H, 128)        # MXU-aligned K/N
    # Note: for very small Dout the 128 lane-padding inflates x/out HBM traffic;
    # lane-dense layout is kept as the default (unmasked vst, aligned MXU).

    # ---- row tiling: whole sequences per tile --------------------------------
    seqs_per_tile = max(1, target_rows // T_pad)
    if B >= 2:
        # Guarantee at least 2 grid tiles so both v7x TensorCores have work.
        seqs_per_tile = min(seqs_per_tile, (B + 1) // 2)
    seqs_per_tile = min(seqs_per_tile, max(B, 1))
    B_pad = _round_up(B, seqs_per_tile)
    num_tiles = B_pad // seqs_per_tile
    RT = seqs_per_tile * T_pad       # rows per tile (multiple of 8)
    R = B_pad * T_pad                # total folded rows
    # TODO(synk): very long T would need a T-tiled grid with an (lorder-1)-row
    # halo carried in VMEM scratch; here each tile holds whole sequences.

    # ---- explicit per-tile VMEM budget (v7x: 64 MiB physical, 32 MiB scoped) -
    w_bytes = (D_pad * H_pad + H_pad * D_pad) * 2 + H_pad * 4 + lorder * D_pad * 4
    wbufs = 1 if _HAS_BUFFERED else 2
    tile_io = RT * D_pad * in_bytes
    tmp_bytes = RT * H_pad * 4 + 3 * RT * D_pad * 4      # f1 + p1/conv/shifted (f32)
    vmem_est = 2 * (tile_io + tile_io) + wbufs * w_bytes + tmp_bytes
    vmem_limit = min(max(int(vmem_est * 2), 32 * 1024 * 1024), 48 * 1024 * 1024)

    # ---- wrapper-side layout prep (plain JAX glue) ---------------------------
    pad_b, pad_t, pad_d = B_pad - B, T_pad - T, D_pad - Din
    if pad_b or pad_t or pad_d:
        x_p = jnp.pad(x, ((0, pad_b), (0, pad_t), (0, pad_d)))
    else:
        x_p = x
    x2 = x_p.reshape(R, D_pad)                                           # native dtype

    w1 = jnp.pad(jnp.asarray(w_lin, f32).T,
                 ((0, D_pad - Din), (0, H_pad - H))).astype(bf16)        # (Dp, Hp)
    b1 = jnp.pad(jnp.asarray(b_lin, f32).reshape(1, H),
                 ((0, 0), (0, H_pad - H)))                               # (1, Hp) f32
    w2 = jnp.pad(jnp.asarray(w_proj, f32).T,
                 ((0, H_pad - H), (0, D_pad - Dout))).astype(bf16)       # (Hp, Dp)
    # Conv tap for delay d (multiplies p1[t-d]) is PyTorch kernel tap lorder-1-d.
    cw = jnp.asarray(w_conv, f32)[:, 0, :, 0][:, ::-1].T                 # (L, Dout)
    cwp = jnp.pad(cw, ((0, 0), (0, D_pad - Dout)))                       # (L, Dp) f32

    kernel = _make_kernel(lorder, T_pad, T)

    cost = pl.CostEstimate(
        flops=4 * R * D_pad * H_pad + 2 * R * D_pad * lorder,
        transcendentals=0,
        bytes_accessed=(2 * R * D_pad * in_bytes            # x read + out write
                        + 2 * D_pad * H_pad * 2              # w1, w2 (bf16)
                        + H_pad * 4 + lorder * D_pad * 4),
    )

    def _const_spec(shape):
        idx_map = lambda i: (0,) * len(shape)
        if _HAS_BUFFERED:
            # Constant index_map: one buffer is enough; the second is VMEM waste.
            return pl.BlockSpec(shape, idx_map, pipeline_mode=pl.Buffered(1))
        return pl.BlockSpec(shape, idx_map)

    out2 = pl.pallas_call(
        kernel,
        out_shape=jax.ShapeDtypeStruct((R, D_pad), in_dtype),
        grid_spec=pltpu.PrefetchScalarGridSpec(
            num_scalar_prefetch=0,
            grid=(num_tiles,),
            in_specs=[
                pl.BlockSpec((RT, D_pad), lambda i: (i, 0)),   # x row tile
                _const_spec((D_pad, H_pad)),                   # w1
                _const_spec((1, H_pad)),                       # b1
                _const_spec((H_pad, D_pad)),                   # w2
                _const_spec((lorder, D_pad)),                  # conv taps
            ],
            out_specs=pl.BlockSpec((RT, D_pad), lambda i: (i, 0)),
        ),
        compiler_params=pltpu.CompilerParams(
            dimension_semantics=("parallel",),
            vmem_limit_bytes=vmem_limit),
        cost_estimate=cost,
    )(x2, w1, b1, w2, cwp)

    # Padded rows/lanes hold by-design garbage (relu-bias leakage); slice off.
    return out2.reshape(B_pad, T_pad, D_pad)[:B, :T, :Dout]


# ----------------------------- references -----------------------------------
def _residual_conv(x, p1, w_conv, lorder):
    cw = w_conv[:, 0, :, 0]                                   # (D, L)
    B, T, D = p1.shape
    padded = jnp.pad(p1, ((0, 0), (lorder - 1, 0), (0, 0)))   # causal left pad
    conv = jnp.zeros_like(p1)
    for k in range(lorder):
        conv = conv + padded[:, k:k + T, :] * cw[None, None, :, k]
    return x + p1 + conv


def uni_deep_fsmn_ref(x, w_lin, b_lin, w_proj, w_conv, lorder):
    """Pure-JAX full-f32 reference of the PyTorch forward."""
    f1 = jax.nn.relu(jnp.einsum("btd,hd->bth", x, w_lin) + b_lin)
    p1 = jnp.einsum("bth,oh->bto", f1, w_proj)
    return _residual_conv(x, p1, w_conv, lorder)


def uni_deep_fsmn_ref_bf16(x, w_lin, b_lin, w_proj, w_conv, lorder):
    """Reference using the same bf16 matmul inputs / f32 accumulation as the kernel."""
    bf16 = jnp.bfloat16
    f1 = jax.nn.relu(
        jnp.einsum("btd,hd->bth", x.astype(bf16), w_lin.astype(bf16),
                   preferred_element_type=jnp.float32) + b_lin)
    p1 = jnp.einsum("bth,oh->bto", f1.astype(bf16), w_proj.astype(bf16),
                    preferred_element_type=jnp.float32)
    return _residual_conv(x.astype(jnp.float32), p1, w_conv, lorder)


if __name__ == "__main__":
    # Small shapes consistent with the module (batch x seq x feature, Din == Dout).
    # Deliberately non-aligned to exercise the padding / folding / multi-tile paths.
    B, T = 8, 36
    input_dim = output_dim = 48
    hidden = 72
    lorder = 5

    key = jax.random.PRNGKey(0)
    k1, k2, k3, k4, k5 = jax.random.split(key, 5)

    x = jax.random.normal(k1, (B, T, input_dim), dtype=jnp.float32)
    w_lin = jax.random.normal(k2, (hidden, input_dim), dtype=jnp.float32) * 0.1
    b_lin = jax.random.normal(k3, (hidden,), dtype=jnp.float32) * 0.1
    w_proj = jax.random.normal(k4, (output_dim, hidden), dtype=jnp.float32) * 0.1
    w_conv = jax.random.normal(k5, (output_dim, 1, lorder, 1), dtype=jnp.float32) * 0.1

    out = uni_deep_fsmn(x, w_lin, b_lin, w_proj, w_conv, lorder)
    out = jax.block_until_ready(out)
    assert out.shape == (B, T, output_dim)
    assert out.dtype == x.dtype

    # Tight check vs. a reference with matching bf16 matmul inputs.
    ref_matched = uni_deep_fsmn_ref_bf16(x, w_lin, b_lin, w_proj, w_conv, lorder)
    assert jnp.allclose(out.astype(jnp.float32), ref_matched, atol=5e-3, rtol=5e-3), \
        "mismatch vs bf16-matched reference"

    # Sanity check vs. the full-f32 PyTorch-equivalent reference (bf16 rounding only).
    ref_f32 = uni_deep_fsmn_ref(x, w_lin, b_lin, w_proj, w_conv, lorder)
    assert jnp.allclose(out.astype(jnp.float32), ref_f32, atol=5e-2, rtol=5e-2), \
        "mismatch vs f32 reference"

    # Also exercise the bf16 input / bf16 output path (no wrapper upcast).
    xb = x.astype(jnp.bfloat16)
    out_b = jax.block_until_ready(
        uni_deep_fsmn(xb, w_lin, b_lin, w_proj, w_conv, lorder))
    assert out_b.dtype == jnp.bfloat16
    assert jnp.allclose(out_b.astype(jnp.float32), ref_f32, atol=1e-1, rtol=1e-1), \
        "mismatch on bf16 input path"

    print("KERNEL_OK")
</pallas_src>

<mosaic_0001>
module attributes {stable_mosaic.version = 11 : i64} {
  func.func @fsmn_kernel(%arg0: i32, %arg1: memref<160x128xf32, #tpu.memory_space<vmem>>, %arg2: memref<128x128xbf16, #tpu.memory_space<vmem>>, %arg3: memref<1x128xf32, #tpu.memory_space<vmem>>, %arg4: memref<128x128xbf16, #tpu.memory_space<vmem>>, %arg5: memref<5x128xf32, #tpu.memory_space<vmem>>, %arg6: memref<160x128xf32, #tpu.memory_space<vmem>>) attributes {dimension_semantics = [#tpu.dimension_semantics<parallel>], iteration_bounds = array<i64: 2>, scalar_prefetch = 0 : i64, scratch_operands = 0 : i64, tpu.core_type = #tpu.core_type<tc>, window_params = [{transform_indices = @transform_0, window_bounds = array<i64: 160, 128>}, {pipeline_mode = #tpu.pipeline_mode<synchronous>, transform_indices = @transform_1, window_bounds = array<i64: 128, 128>}, {pipeline_mode = #tpu.pipeline_mode<synchronous>, transform_indices = @transform_2, window_bounds = array<i64: 1, 128>}, {pipeline_mode = #tpu.pipeline_mode<synchronous>, transform_indices = @transform_3, window_bounds = array<i64: 128, 128>}, {pipeline_mode = #tpu.pipeline_mode<synchronous>, transform_indices = @transform_4, window_bounds = array<i64: 5, 128>}, {transform_indices = @transform_5, window_bounds = array<i64: 160, 128>}]} {
    %c0 = arith.constant 0 : index
    %c0_0 = arith.constant 0 : index
    %0 = vector.load %arg1[%c0, %c0_0] : memref<160x128xf32, #tpu.memory_space<vmem>>, vector<160x128xf32>
    %1 = arith.truncf %0 : vector<160x128xf32> to vector<160x128xbf16>
    %c0_1 = arith.constant 0 : index
    %c0_2 = arith.constant 0 : index
    %2 = vector.load %arg2[%c0_1, %c0_2] : memref<128x128xbf16, #tpu.memory_space<vmem>>, vector<128x128xbf16>
    %cst = arith.constant dense<0.000000e+00> : vector<160x128xf32>
    %3 = tpu.matmul %1, %2, %cst {dimension_numbers = #tpu.dot_dimension_numbers<[1], [0], [0], [1], [0, 0, 1, 1], [], []>} : vector<160x128xbf16>, vector<128x128xbf16>, vector<160x128xf32> -> vector<160x128xf32>
    %c0_3 = arith.constant 0 : index
    %c0_4 = arith.constant 0 : index
    %4 = vector.load %arg3[%c0_3, %c0_4] : memref<1x128xf32, #tpu.memory_space<vmem>>, vector<1x128xf32>
    %5 = vector.broadcast %4 : vector<1x128xf32> to vector<160x128xf32>
    %6 = arith.addf %3, %5 : vector<160x128xf32>
    %cst_5 = arith.constant 0.000000e+00 : f32
    %7 = vector.broadcast %cst_5 : f32 to vector<160x128xf32>
    %8 = arith.maximumf %6, %7 : vector<160x128xf32>
    %9 = arith.truncf %8 : vector<160x128xf32> to vector<160x128xbf16>
    %c0_6 = arith.constant 0 : index
    %c0_7 = arith.constant 0 : index
    %10 = vector.load %arg4[%c0_6, %c0_7] : memref<128x128xbf16, #tpu.memory_space<vmem>>, vector<128x128xbf16>
    %cst_8 = arith.constant dense<0.000000e+00> : vector<160x128xf32>
    %11 = tpu.matmul %9, %10, %cst_8 {dimension_numbers = #tpu.dot_dimension_numbers<[1], [0], [0], [1], [0, 0, 1, 1], [], []>} : vector<160x128xbf16>, vector<128x128xbf16>, vector<160x128xf32> -> vector<160x128xf32>
    %12 = tpu.iota {dimensions = array<i32: 0>} : vector<160x1xi32>
    %c40_i32 = arith.constant 40 : i32
    %c0_i32 = arith.constant 0 : i32
    %13 = arith.cmpi eq, %c40_i32, %c0_i32 : i32
    %c1_i32 = arith.constant 1 : i32
    %14 = arith.select %13, %c1_i32, %c40_i32 : i32
    %15 = vector.broadcast %14 : i32 to vector<160x1xi32>
    %16 = arith.remsi %12, %15 : vector<160x1xi32>
    %c0_i32_9 = arith.constant 0 : i32
    %17 = vector.broadcast %c0_i32_9 : i32 to vector<160x1xi32>
    %18 = arith.cmpi ne, %16, %17 : vector<160x1xi32>
    %c0_i32_10 = arith.constant 0 : i32
    %19 = vector.broadcast %c0_i32_10 : i32 to vector<160x1xi32>
    %20 = arith.cmpi slt, %16, %19 : vector<160x1xi32>
    %c0_i32_11 = arith.constant 0 : i32
    %21 = arith.cmpi slt, %14, %c0_i32_11 : i32
    %22 = vector.broadcast %21 : i1 to vector<160x1xi1>
    %23 = vector.broadcast %22 : vector<160x1xi1> to vector<160x1xi1>
    %24 = arith.xori %20, %23 : vector<160x1xi1>
    %25 = arith.andi %24, %18 : vector<160x1xi1>
    %26 = vector.broadcast %14 : i32 to vector<160x1xi32>
    %27 = arith.addi %16, %26 : vector<160x1xi32>
    %28 = arith.select %25, %27, %16 : vector<160x1xi1>, vector<160x1xi32>
    %c36_i32 = arith.constant 36 : i32
    %29 = vector.broadcast %c36_i32 : i32 to vector<160x1xi32>
    %30 = arith.cmpi slt, %28, %29 : vector<160x1xi32>
    %cst_12 = arith.constant 0.000000e+00 : f32
    %31 = vector.shape_cast %30 : vector<160x1xi1> to vector<160x1xi1>
    %32 = vector.broadcast %31 : vector<160x1xi1> to vector<160x128xi1>
    %33 = vector.broadcast %cst_12 : f32 to vector<160x128xf32>
    %34 = arith.select %32, %11, %33 : vector<160x128xi1>, vector<160x128xf32>
    %c0_13 = arith.constant 0 : index
    %c0_14 = arith.constant 0 : index
    %35 = vector.load %arg5[%c0_13, %c0_14] : memref<5x128xf32, #tpu.memory_space<vmem>>, vector<1x128xf32>
    %36 = vector.broadcast %35 : vector<1x128xf32> to vector<160x128xf32>
    %37 = arith.mulf %34, %36 : vector<160x128xf32>
    %c1_i32_15 = arith.constant 1 : i32
    %38 = tpu.dynamic_rotate %34 by %c1_i32_15 dim 0 : vector<160x128xf32>, i32 -> vector<160x128xf32>
    %c1 = arith.constant 1 : index
    %c0_16 = arith.constant 0 : index
    %39 = vector.load %arg5[%c1, %c0_16] : memref<5x128xf32, #tpu.memory_space<vmem>>, vector<1x128xf32>
    %40 = vector.broadcast %39 : vector<1x128xf32> to vector<160x128xf32>
    %41 = arith.mulf %38, %40 : vector<160x128xf32>
    %42 = arith.addf %37, %41 : vector<160x128xf32>
    %c2_i32 = arith.constant 2 : i32
    %43 = tpu.dynamic_rotate %34 by %c2_i32 dim 0 : vector<160x128xf32>, i32 -> vector<160x128xf32>
    %c2 = arith.constant 2 : index
    %c0_17 = arith.constant 0 : index
    %44 = vector.load %arg5[%c2, %c0_17] : memref<5x128xf32, #tpu.memory_space<vmem>>, vector<1x128xf32>
    %45 = vector.broadcast %44 : vector<1x128xf32> to vector<160x128xf32>
    %46 = arith.mulf %43, %45 : vector<160x128xf32>
    %47 = arith.addf %42, %46 : vector<160x128xf32>
    %c3_i32 = arith.constant 3 : i32
    %48 = tpu.dynamic_rotate %34 by %c3_i32 dim 0 : vector<160x128xf32>, i32 -> vector<160x128xf32>
    %c3 = arith.constant 3 : index
    %c0_18 = arith.constant 0 : index
    %49 = vector.load %arg5[%c3, %c0_18] : memref<5x128xf32, #tpu.memory_space<vmem>>, vector<1x128xf32>
    %50 = vector.broadcast %49 : vector<1x128xf32> to vector<160x128xf32>
    %51 = arith.mulf %48, %50 : vector<160x128xf32>
    %52 = arith.addf %47, %51 : vector<160x128xf32>
    %c4_i32 = arith.constant 4 : i32
    %53 = tpu.dynamic_rotate %34 by %c4_i32 dim 0 : vector<160x128xf32>, i32 -> vector<160x128xf32>
    %c4 = arith.constant 4 : index
    %c0_19 = arith.constant 0 : index
    %54 = vector.load %arg5[%c4, %c0_19] : memref<5x128xf32, #tpu.memory_space<vmem>>, vector<1x128xf32>
    %55 = vector.broadcast %54 : vector<1x128xf32> to vector<160x128xf32>
    %56 = arith.mulf %53, %55 : vector<160x128xf32>
    %57 = arith.addf %52, %56 : vector<160x128xf32>
    %58 = arith.addf %0, %34 : vector<160x128xf32>
    %59 = arith.addf %58, %57 : vector<160x128xf32>
    %c0_20 = arith.constant 0 : index
    %c0_21 = arith.constant 0 : index
    %60 = vector.load %arg6[%c0_20, %c0_21] : memref<160x128xf32, #tpu.memory_space<vmem>>, vector<160x128xf32>
    tpu.vector_store %arg6[%c0_20, %c0_21], %59 {strides = array<i32>} : memref<160x128xf32, #tpu.memory_space<vmem>>, vector<160x128xf32>,
    return
  }
  func.func @transform_0(%arg0: i32) -> (i32, i32) {
    %c0_i32 = arith.constant 0 : i32
    %c0_i32_0 = arith.constant 0 : i32
    return %arg0, %c0_i32 : i32, i32
  }
  func.func @transform_1(%arg0: i32) -> (i32, i32) {
    %c0_i32 = arith.constant 0 : i32
    %c0_i32_0 = arith.constant 0 : i32
    %c0_i32_1 = arith.constant 0 : i32
    return %c0_i32, %c0_i32_0 : i32, i32
  }
  func.func @transform_2(%arg0: i32) -> (i32, i32) {
    %c0_i32 = arith.constant 0 : i32
    %c0_i32_0 = arith.constant 0 : i32
    %c0_i32_1 = arith.constant 0 : i32
    return %c0_i32, %c0_i32_0 : i32, i32
  }
  func.func @transform_3(%arg0: i32) -> (i32, i32) {
    %c0_i32 = arith.constant 0 : i32
    %c0_i32_0 = arith.constant 0 : i32
    %c0_i32_1 = arith.constant 0 : i32
    return %c0_i32, %c0_i32_0 : i32, i32
  }
  func.func @transform_4(%arg0: i32) -> (i32, i32) {
    %c0_i32 = arith.constant 0 : i32
    %c0_i32_0 = arith.constant 0 : i32
    %c0_i32_1 = arith.constant 0 : i32
    return %c0_i32, %c0_i32_0 : i32, i32
  }
  func.func @transform_5(%arg0: i32) -> (i32, i32) {
    %c0_i32 = arith.constant 0 : i32
    %c0_i32_0 = arith.constant 0 : i32
    return %arg0, %c0_i32 : i32, i32
  }
}

</mosaic_0001>

<bundles_post_ra>
// kernel: tpu_custom_call.1
= control target key start
LH: loop header
LB: loop body
LE: loop exit
PB: predicated region body
PF: predicated region fallthrough
CT: control target
= control target key end

     0   :  { %10 = vsyncpa [#allocation3], 0  ;;  %s3856_s0 = inlined_call_operand.hbm [shape: f32[320,128], index: 0, kind: input, shape index: {}]   ;;  %s3857_s1 = inlined_call_operand.hbm [shape: bf16[128,128], index: 1, kind: input, shape index: {}]   ;;  %s3858_s2 = inlined_call_operand.vmem [shape: f32[1,128], index: 2, kind: input, shape index: {}]   ;;  %s3859_s3 = inlined_call_operand.hbm [shape: bf16[128,128], index: 3, kind: input, shape index: {}]   ;;  %s3860_s4 = inlined_call_operand.vmem [shape: f32[5,128], index: 4, kind: input, shape index: {}]   ;;  %s3861_s5 = inlined_call_operand.hbm [shape: f32[320,128], index: 5, kind: output, shape index: {}]  }
   0x1   :  { %12 = vsyncpa [#allocation3 + $0x1], 0 }
   0x2   :  { %13 = vsyncpa [#allocation6], 0 }
   0x3   :  { %14 = vsyncpa [#allocation4], 0 }
   0x4   :  { %16 = vsyncpa [#allocation4 + $0x1], 0  ;;  %s2139_s18 = smov 0   ;;  %s2141_s19 = smov 0  }
   0x5   :  { %s2143_s20 = smov 0   ;;  %s2145_s21 = smov 0  }
   0x6 LB: > { %s2160_s22 = sadd.s32 4294967295, %s2097_s21   ;;  %s1652_s23 = sadd.s32 4294967294, %s2097_s21   ;;  %s2097_s21 = sphi %s2145_s21, %s4176_s21   ;;  %s2093_s20 = sphi %s2143_s20, %s4175_s20   ;;  %s2089_s19 = sphi %s2141_s19, %s4174_s19   ;;  %s2085_s18 = sphi %s2139_s18, %s4173_s18  }
   0x7   : > { %p42_p0 = scmp.ne.s32.totalorder %s2089_s19, %s2085_s18  ;;  %p3862_p1 = scmp.eq.s32.totalorder %s2160_s22, 0 }
   0x8   : > { %p156_p3 = scmp.eq.s32.totalorder %s1652_s23, 1  ;;  %p1653_p5 = scmp.ge.s32.totalorder %s2097_s21, 1 }
   0x9   : > { %p2169_p4 = por %p3862_p1, %p42_p0  ;;  %p163_p7 = scmp.lt.s32.totalorder %s2097_s21, 3 }
   0xa   : > { %p2174_p6 = por %p156_p3, %p42_p0  ;;  %s2099_s27 = smov [#allocation5]  }
   0xb   : > { %s3897_s24 = scalar_select %p2169_p4, 1, 0 }
   0xc   : > { %s3898_s25 = scalar_select %p2174_p6, 1, 0 }
   0xd   : > { %p2179_p8 = pnand %p1653_p5, %p163_p7  ;;  %s175_s28 = sshll.u32 %s2099_s27, 4  ;;  %s2183_s28 = int_to_ptr.vmem [resolvable:$true] %s175_s28 }
   0xe   : > { %s2100_s30 = smov [#allocation7]   ;;  %s1941_s9 = scalar_lea.hbm %s3857_s1, 1024 }
   0xf   : > { %p1850_p9 = pneg %p2179_p8  ;;  %s191_s6 = sshll.u32 %s2100_s30, 4  ;;  %s2194_s6 = int_to_ptr.vmem [resolvable:$true] %s191_s6 }
  0x10   : > { %p1942_p12 = scmp.ne.s32.totalorder %s3857_s1, %s1941_s9  ;;  %p1948_p5 = scmp.lt.u32.totalorder %s1941_s9, %s3857_s1 }
  0x11   : > { %p2190_p11 = pnand %p1850_p9, %p3862_p1 }
  0x13   : > { %p1943_p13 = pneg %p2190_p11 }
  0x15   : > { %p1944_p0 = pnand %p1943_p13, %p1942_p12 }
  0x17   : > { %p1945_p3 = pneg %p1944_p0 }
  0x19   : > { %p1950_p7 = pnand %p1948_p5, %p1945_p3 }
  0x1b   : > { %1953 = shalt.err (!%p1950_p7)
}
  0x1c   : > { %s1954_s14 = scalar_lea.vmem %s2183_s28, 1024  ;;  %p1962_p2 = scmp.lt.s32.totalorder %s2183_s28, %s2183_s28 }
  0x1d   : > { %p1955_p9 = scmp.ne.s32.totalorder %s2183_s28, %s1954_s14  ;;  %p1963_p12 = scmp.lt.s32.totalorder %s1954_s14, %s1954_s14 }
  0x1f   : > { %p1957_p10 = pnand %p1955_p9, %p1943_p13  ;;  %p1964_p0 = por %p1963_p12, %p1962_p2 }
  0x21   : > { %p1958_p1 = pneg %p1957_p10 }
  0x23   : > { %p1965_p6 = pnand %p1964_p0, %p1958_p1 }
  0x25   : > { %1968 = shalt.err (!%p1965_p6)
}
  0x26   : > { %s2101_s15 = smov 64   ;;  %s2102_s16 = smov 4  }
  0x27   : > { %1853 = dma.hbm_to_vmem [thread:$0]  (!%p2190_p11), %s3857_s1, 1024, %s2183_s28, [#allocation6], %s2101_s15, %s2101_s15, %s2102_s16  }
  0x28   : > { %s1969_s7 = scalar_lea.hbm %s3859_s3, 1024 }
  0x29   : > { %p1970_p2 = scmp.ne.s32.totalorder %s3859_s3, %s1969_s7  ;;  %p1976_p10 = scmp.lt.u32.totalorder %s1969_s7, %s3859_s3 }
  0x2b   : > { %p1972_p1 = pnand %p1970_p2, %p1943_p13 }
  0x2d   : > { %p1973_p6 = pneg %p1972_p1 }
  0x2f   : > { %p1978_p3 = pnand %p1976_p10, %p1973_p6 }
  0x31   : > { %1981 = shalt.err (!%p1978_p3)
}
  0x32   : > { %s1982_s28 = scalar_lea.vmem %s2194_s6, 1024  ;;  %p1990_p12 = scmp.lt.s32.totalorder %s2194_s6, %s2194_s6 }
  0x33   : > { %p1983_p5 = scmp.ne.s32.totalorder %s2194_s6, %s1982_s28  ;;  %p1991_p0 = scmp.lt.s32.totalorder %s1982_s28, %s1982_s28 }
  0x35   : > { %p1985_p7 = pnand %p1983_p5, %p1943_p13  ;;  %p1992_p2 = por %p1991_p0, %p1990_p12 }
  0x37   : > { %p1986_p9 = pneg %p1985_p7 }
  0x39   : > { %p1993_p1 = pnand %p1992_p2, %p1986_p9 }
  0x3b   : > { %1996 = shalt.err (!%p1993_p1)
}
  0x3c   : > { %1856 = dma.hbm_to_vmem [thread:$0]  (!%p2190_p11), %s3859_s3, 1024, %s2194_s6, [#allocation6], %s2101_s15, %s2101_s15, %s2102_s16  }
  0x3d   : > { %s2249_s14 = sadd.s32 1, %s2097_s21   ;;  %s29_s29 = sadd.s32 1, %s2093_s20 }
  0x3e   : > { %s26_s17 = ssub.s32 %s2097_s21, %s2249_s14  ;;  %p36_p13 = scmp.ne.s32.totalorder %s2093_s20, %s2089_s19 }
  0x3f   : > { %p27_p6 = scmp.eq.s32.totalorder %s26_s17, 0  ;;  %p37_p10 = scmp.eq.s32.totalorder %s2097_s21, 0 }
  0x40   : > { %p3901_p3 = scmp.eq.s32.totalorder %s2160_s22, 1  ;;  %p1867_p7 = scmp.lt.s32.totalorder %s2097_s21, 2 }
  0x41   : > { %s2265_s27 = scalar_select %p27_p6, %s2093_s20, %s29_s29  }
  0x42   : > { %p2259_p5 = por %p3901_p3, %p36_p13  ;;  %p38_p9 = por %p37_p10, %p36_p13 }
  0x43   : > { %s208_s30 = sand.u32 1, %s2093_s20   ;;  %s1686_s6 = smul.u32 2560, %s2097_s21 }
  0x44   : > { %s3902_s23 = scalar_select %p2259_p5, 1, 0 }
  0x45   : > { %s1796_s7 = smul.u32 160, %s208_s30  ;;  %p2269_p11 = pnand %p1867_p7, %p38_p9 }
  0x46   : > { %s2276_s9 = scalar_lea.hbm %s3856_s0, %s1686_s6  ;;  %s2280_s28 = scalar_lea.sflag [#allocation3], %s208_s30 }
  0x47   : > { %s212_s10 = scalar_lea.vmem [#allocation2], %s1796_s7  ;;  %s1997_s12 = scalar_lea.hbm %s2276_s9, 2560 }
  0x48   : > { %s219_s11 = sshll.u32 %s212_s10, 4  ;;  %p1998_p12 = scmp.ne.s32.totalorder %s2276_s9, %s1997_s12  ;;  %s2278_s11 = int_to_ptr.vmem [resolvable:$true] %s219_s11 }
  0x49   : > { %p1999_p0 = pneg %p2269_p11  ;;  %s2002_s17 = scalar_lea.hbm %s3856_s0, 5120 }
  0x4a   : > { %p2003_p13 = scmp.lt.u32.totalorder %s2276_s9, %s3856_s0  ;;  %p2004_p6 = scmp.lt.u32.totalorder %s2002_s17, %s1997_s12 }
  0x4b   : > { %p2000_p2 = pnand %p1999_p0, %p1998_p12  ;;  %p2006_p3 = scmp.lt.u32.totalorder %s1997_s12, %s2276_s9 }
  0x4c   : > { %p2005_p10 = por %p2004_p6, %p2003_p13 }
  0x4d   : > { %p2001_p1 = pneg %p2000_p2 }
  0x4e   : > { %p2007_p7 = por %p2006_p3, %p2005_p10 }
  0x50   : > { %p2008_p9 = pnand %p2007_p7, %p2001_p1 }
  0x52   : > { %2011 = shalt.err (!%p2008_p9)
}
  0x53   : > { %s2012_s30 = scalar_lea.vmem %s2278_s11, 2560  ;;  %s2103_s7 = smov [#allocation2]  }
  0x54   : > { %p2013_p12 = scmp.ne.s32.totalorder %s2278_s11, %s2012_s30  ;;  %s2017_s8 = sshll.u32 %s2103_s7, 4  ;;  %s2018_s8 = int_to_ptr.vmem [resolvable:$false] %s2017_s8 }
  0x55   : > { %s2019_s10 = scalar_lea.vmem %s2018_s8, 5120  ;;  %p2020_p4 = scmp.lt.s32.totalorder %s2278_s11, %s2018_s8 }
  0x56   : > { %p2015_p2 = pnand %p2013_p12, %p1999_p0  ;;  %p2021_p13 = scmp.lt.s32.totalorder %s2019_s10, %s2012_s30 }
  0x58   : > { %p2016_p5 = pneg %p2015_p2  ;;  %p2022_p6 = por %p2021_p13, %p2020_p4 }
  0x5a   : > { %p2023_p10 = pnand %p2022_p6, %p2016_p5 }
  0x5c   : > { %2026 = shalt.err (!%p2023_p10)
}
  0x5d   : > { %s2104_s12 = smov 128   ;;  %s2105_s13 = smov 8  }
  0x5e   : > { %1860 = dma.hbm_to_vmem [thread:$0]  (!%p2269_p11), %s2276_s9, 2560, %s2278_s11, %s2280_s28, %s2104_s12, %s2104_s12, %s2105_s13  }
  0x5f   : > { %231 = sbr.rel (%p2179_p8) target bundleno = 711 (0x2c7), region = 40 }
  0x66   : > { %s2311_s29 = sand.u32 1, %s2089_s19   ;;  %p3904_p4 = scmp.ne.s32.totalorder %s3897_s24, 0 }
  0x67   : > { %s1797_s17 = smul.u32 160, %s2311_s29  ;;  %s234_s6 = scalar_lea.sflag [#allocation3], %s2311_s29 }
  0x69   : > { %s2317_s16 = scalar_lea.vmem [#allocation2], %s1797_s17 }
  0x6a   : > { %2072 = dma.done.wait (%p3904_p4), %s234_s6, 2560  }
  0x6b   : > { %2074 = vsyncadd (%p3904_p4), %s234_s6, 4294964736  ;;  %p3905_p5 = scmp.eq.s32.totalorder %s2160_s22, 0 }
  0x6d   : > { %2076 = dma.done.wait (%p3905_p5), [#allocation6], 2048   ;;  %p3906_p8 = pmov %p3905_p5 }
  0x6e   : > { %v1911_v0 = vld [vmem:[#allocation5] sm:$0xff]   ;;  %v1912_v1 = vld [vmem:[#allocation5 + $0x8] sm:$0xff]   ;;  %v1913_v2 = vld [vmem:[#allocation5 + $0x10] sm:$0xff]   ;;  %s3139_s6 = scalar_lea.vmem [#allocation8], %s1797_s17  ;;  %s1687_s17 = smul.u32 2560, %s2160_s22 }
  0x6f   : > { %2078 = vsyncadd (%p3906_p8), [#allocation6], 4294965248  ;;  %1724 = vmatprep.subr.bf16.mxu0 %v1911_v0  ;;  %v1914_v3 = vld [vmem:[#allocation5 + $0x18] sm:$0xff]   ;;  %v275_v4 = vld [vmem:[%s2317_s16] sm:$0xff]  ;;  %s1560_s24 = sshll.u32 %s3139_s6, 4  ;;  %s1547_s9 = scalar_lea.sflag [#allocation4], %s2311_s29  ;;  %s3810_s24 = int_to_ptr.vmem [resolvable:$true] %s1560_s24 }
  0x70   : > { %1725 = vmatpush3.bf16.msra.mxu0 %v1911_v0  ;;  %v2329_v5 = vld [vmem:[%s2317_s16 + $0x8] sm:$0xff]  ;;  %v1915_v7 = vld [vmem:[#allocation5 + $0x20] sm:$0xff]   ;;  %v1921_v11 = vld [vmem:[#allocation7 + $0x10] sm:$0xff]   ;;  %s3808_s15 = scalar_lea.hbm %s3861_s5, %s1687_s17  ;;  %s2027_s11 = scalar_lea.vmem %s3810_s24, 2560 }
  0x71   : > { %1726 = vmatprep.subr.bf16.mxu0 %v1912_v1  ;;  %v295_v6 = vpack.c.bf16 %v2329_v5, %v275_v4  ;;  %v1916_v8 = vld [vmem:[#allocation5 + $0x28] sm:$0xff]   ;;  %v1919_v9 = vld [vmem:[#allocation7] sm:$0xff]   ;;  %v1917_v12 = vld [vmem:[#allocation5 + $0x30] sm:$0xff]   ;;  %p2028_p11 = scmp.ne.s32.totalorder %s3810_s24, %s2027_s11  ;;  %p4170_p0 = scmp.ne.s32.totalorder %s3902_s23, 0 }
  0x72   : > { %v1920_v10 = vld [vmem:[#allocation7 + $0x8] sm:$0xff]   ;;  %1760 = vmatprep.subr.bf16.mxu1 %v1919_v9  ;;  %v1922_v13 = vld [vmem:[#allocation7 + $0x18] sm:$0xff]   ;;  %v2333_v15 = vld [vmem:[%s2317_s16 + $0x10] sm:$0xff] }
  0x73   : > { %1740 = vmatprep.mubr.bf16.mxu0 %v295_v6  ;;  %1761 = vmatpush3.bf16.msra.mxu1 %v1919_v9  ;;  %v1918_v14 = vld [vmem:[#allocation5 + $0x38] sm:$0xff]   ;;  %v1923_v17 = vld [vmem:[#allocation7 + $0x20] sm:$0xff]   ;;  %v280_v19 = vld [vmem:[%s2317_s16 + $0x28] sm:$0xff]  ;;  %p2029_p1 = pnand %p2028_p11, %p4170_p0 }
  0x74   : > { %1727 = vmatpush3.bf16.msra.mxu0 %v1912_v1  ;;  %1762 = vmatprep.subr.bf16.mxu1 %v1920_v10  ;;  %v2336_v16 = vld [vmem:[%s2317_s16 + $0x18] sm:$0xff]  ;;  %v2339_v18 = vld [vmem:[%s2317_s16 + $0x20] sm:$0xff]  ;;  %v1924_v22 = vld [vmem:[#allocation7 + $0x28] sm:$0xff]  }
  0x75   : > { %1728 = vmatprep.subr.bf16.mxu0 %v1913_v2  ;;  %v296_v20 = vpack.c.bf16 %v2336_v16, %v2333_v15  ;;  %v297_v21 = vpack.c.bf16 %v280_v19, %v2339_v18  ;;  %v2346_v23 = vld [vmem:[%s2317_s16 + $0x30] sm:$0xff]  ;;  %v2349_v24 = vld [vmem:[%s2317_s16 + $0x38] sm:$0xff]  ;;  %v283_v25 = vld [vmem:[%s2317_s16 + $0x40] sm:$0xff]  ;;  %p2030_p3 = pneg %p2029_p1 }
  0x76   : > { %v284_v26 = vld [vmem:[%s2317_s16 + $0x48] sm:$0xff]  ;;  %v298_v27 = vpack.c.bf16 %v2349_v24, %v2346_v23  ;;  %v285_v29 = vld [vmem:[%s2317_s16 + $0x50] sm:$0xff]  ;;  %v286_v30 = vld [vmem:[%s2317_s16 + $0x58] sm:$0xff] }
  0x77   : > { %1763 = vmatpush3.bf16.msra.mxu1 %v1920_v10  ;;  %v299_v28 = vpack.c.bf16 %v284_v26, %v283_v25  ;;  %v287_v31 = vld [vmem:[%s2317_s16 + $0x60] sm:$0xff]  ;;  %v288_v32 = vld [vmem:[%s2317_s16 + $0x68] sm:$0xff]  ;;  %v300_v33 = vpack.c.bf16 %v286_v30, %v285_v29  ;;  %v289_v35 = vld [vmem:[%s2317_s16 + $0x70] sm:$0xff] }
  0x78   : > { %1729 = vmatpush3.bf16.msra.mxu0 %v1913_v2  ;;  %1764 = vmatprep.subr.bf16.mxu1 %v1921_v11  ;;  %v301_v34 = vpack.c.bf16 %v288_v32, %v287_v31  ;;  %v290_v36 = vld [vmem:[%s2317_s16 + $0x78] sm:$0xff]  ;;  %v291_v37 = vld [vmem:[%s2317_s16 + $0x80] sm:$0xff]  ;;  %v292_v38 = vld [vmem:[%s2317_s16 + $0x88] sm:$0xff] }
  0x79   : > { %1730 = vmatprep.subr.bf16.mxu0 %v1914_v3  ;;  %v302_v39 = vpack.c.bf16 %v290_v36, %v289_v35  ;;  %v303_v40 = vpack.c.bf16 %v292_v38, %v291_v37  ;;  %v293_v41 = vld [vmem:[%s2317_s16 + $0x90] sm:$0xff]  ;;  %v294_v42 = vld [vmem:[%s2317_s16 + $0x98] sm:$0xff]  ;;  %v2368_v46 = vld [vmem:[%s3858_s2] ss:$0 sm:$0xff] }
  0x7a   : > { %v304_v43 = vpack.c.bf16 %v294_v42, %v293_v41  ;;  %v1925_v44 = vld [vmem:[#allocation7 + $0x30] sm:$0xff]   ;;  %v1926_v45 = vld [vmem:[#allocation7 + $0x38] sm:$0xff]  }
  0x7b   : > { %1765 = vmatpush3.bf16.msra.mxu1 %v1921_v11 }
  0x7c   : > { %1731 = vmatpush3.bf16.msra.mxu0 %v1914_v3  ;;  %1766 = vmatprep.subr.bf16.mxu1 %v1922_v13 }
  0x7d   : > { %1732 = vmatprep.subr.bf16.mxu0 %v1915_v7 }
  0x7f   : > { %1767 = vmatpush3.bf16.msra.mxu1 %v1922_v13 }
  0x80   : > { %1733 = vmatpush3.bf16.msra.mxu0 %v1915_v7  ;;  %1768 = vmatprep.subr.bf16.mxu1 %v1923_v17 }
  0x81   : > { %1734 = vmatprep.subr.bf16.mxu0 %v1916_v8 }
  0x83   : > { %1769 = vmatpush3.bf16.msra.mxu1 %v1923_v17 }
  0x84   : > { %1735 = vmatpush3.bf16.msra.mxu0 %v1916_v8  ;;  %1770 = vmatprep.subr.bf16.mxu1 %v1924_v22 }
  0x85   : > { %1736 = vmatprep.subr.bf16.mxu0 %v1917_v12 }
  0x87   : > { %1771 = vmatpush3.bf16.msra.mxu1 %v1924_v22 }
  0x88   : > { %1737 = vmatpush3.bf16.msra.mxu0 %v1917_v12  ;;  %1772 = vmatprep.subr.bf16.mxu1 %v1925_v44 }
  0x89   : > { %1738 = vmatprep.subr.bf16.mxu0 %v1918_v14 }
  0x8b   : > { %1773 = vmatpush3.bf16.msra.mxu1 %v1925_v44 }
  0x8c   : > { %1739 = vmatpush3.bf16.msra.mxu0 %v1918_v14  ;;  %1774 = vmatprep.subr.bf16.mxu1 %v1926_v45 }
  0x8f   : > { %1741 = vmatmul.mubr.bf16.vlgmr.msra.gmra.mrb[0].mxu0 %v296_v20  ;;  %1775 = vmatpush3.bf16.msra.mxu1 %v1926_v45 }
  0x90   : > { %1744 = vmatprep.mubr.bf16.mxu0 %v297_v21 }
  0x97   : > { %1745 = vmatmul.mubr.bf16.gmra.mrb[4].mxu0 %v298_v27 }
  0x98   : > { %1748 = vmatprep.mubr.bf16.mxu0 %v299_v28 }
  0x9f   : > { %1749 = vmatmul.mubr.bf16.gmra.mrb[8].mxu0 %v300_v33 }
  0xa0   : > { %1752 = vmatprep.mubr.bf16.mxu0 %v301_v34 }
  0xa7   : > { %1753 = vmatmul.mubr.bf16.gmra.mrb[12].mxu0 %v302_v39 }
  0xa8   : > { %1756 = vmatprep.mubr.bf16.mxu0 %v303_v40 }
  0xaf   : > { %1757 = vmatmul.mubr.bf16.gmra.mrb[16].mxu0 %v304_v43 }
 0x162   : > { %v1742_v47 = vpop.f32.mrb[0].mxu0 }
 0x163   : > { %v419_v48 = vadd.f32 %v1742_v47, %v2368_v46  ;;  %v410_v49 = vpop.f32.mrb[1].mxu0 }
 0x164   : > { %v411_v50 = vadd.f32 %v2368_v46, %v410_v49  ;;  %v1743_v51 = vpop.f32.mrb[2].mxu0 }
 0x165   : > { %v422_v52 = vadd.f32 %v1743_v51, %v2368_v46  ;;  %v413_v53 = vpop.f32.mrb[3].mxu0  ;;  %v491_v55 = vmax.f32 %v419_v48, 0.0 }
 0x166   : > { %v414_v54 = vadd.f32 %v2368_v46, %v413_v53  ;;  %v489_v57 = vmax.f32 %v411_v50, 0.0 }
 0x167   : > { %v492_v56 = vmax.f32 %v422_v52, 0.0 }
 0x168   : > { %v490_v58 = vmax.f32 %v414_v54, 0.0 }
 0x169   : > { %v510_v59 = vpack.c.bf16 %v492_v56, %v491_v55 }
 0x16a   : > { %v1746_v60 = vpop.f32.mrb[4].mxu0  ;;  %v509_v61 = vpack.c.bf16 %v490_v58, %v489_v57 }
 0x16b   : > { %v435_v62 = vadd.f32 %v1746_v60, %v2368_v46  ;;  %v426_v63 = vpop.f32.mrb[5].mxu0  ;;  %v696_v60 = vlaneseq }
 0x16c   : > { %v427_v0 = vadd.f32 %v2368_v46, %v426_v63  ;;  %v1747_v1 = vpop.f32.mrb[6].mxu0  ;;  %1776 = vmatprep.mubr.bf16.mxu1 %v509_v61 }
 0x16d   : > { %v438_v2 = vadd.f32 %v1747_v1, %v2368_v46  ;;  %v429_v3 = vpop.f32.mrb[7].mxu0  ;;  %1777 = vmatmul.mubr.bf16.vlgmr.msra.gmra.mrb[0].mxu1 %v510_v59  ;;  %v495_v6 = vmax.f32 %v435_v62, 0.0  ;;  %v2390_v61 = vshrl.u32 %v696_v60, 7 }
 0x16e   : > { %v430_v4 = vadd.f32 %v2368_v46, %v429_v3  ;;  %v493_v8 = vmax.f32 %v427_v0, 0.0 }
 0x16f   : > { %v496_v7 = vmax.f32 %v438_v2, 0.0  ;;  %v699_v62 = vadd.s32 16, %v2390_v61  ;;  %v2397_v1 = vmul.u32.u64.low 3435973837, %v2390_v61  ;;  %v2398_v2 = vmul.u32.u64.high 3435973837, %v2390_v61, %v2397_v1 }
 0x170   : > { %v494_v9 = vmax.f32 %v430_v4, 0.0  ;;  %v698_v3 = vadd.s32 8, %v2390_v61  ;;  %v2515_v60 = vadd.s32 120, %v2390_v61  ;;  %v2523_v1 = vadd.s32 104, %v2390_v61 }
 0x171   : > { %v512_v10 = vpack.c.bf16 %v496_v7, %v495_v6  ;;  %v2393_v63 = vmul.u32.u64.low 3435973837, %v699_v62  ;;  %v2394_v0 = vmul.u32.u64.high 3435973837, %v699_v62, %v2393_v63 }
 0x172   : > { %v511_v11 = vpack.c.bf16 %v494_v9, %v493_v8  ;;  %v1750_v12 = vpop.f32.mrb[8].mxu0  ;;  %v723_v8 = vshrl.u32 %v2398_v2, 5 }
 0x173   : > { %v451_v13 = vadd.f32 %v1750_v12, %v2368_v46  ;;  %v442_v14 = vpop.f32.mrb[9].mxu0  ;;  %v745_v4 = vshrl.u32 %v2394_v0, 5 }
 0x174   : > { %v443_v17 = vadd.f32 %v2368_v46, %v442_v14  ;;  %v1751_v19 = vpop.f32.mrb[10].mxu0  ;;  %1780 = vmatprep.mubr.bf16.mxu1 %v511_v11  ;;  %v724_v12 = vmul.u32 40, %v723_v8 }
 0x175   : > { %v454_v20 = vadd.f32 %v1751_v19, %v2368_v46  ;;  %v445_v21 = vpop.f32.mrb[11].mxu0  ;;  %1781 = vmatmul.mubr.bf16.gmra.mrb[4].mxu1 %v512_v10  ;;  %v499_v25 = vmax.f32 %v451_v13, 0.0  ;;  %v2407_v9 = vmul.u32.u64.low 3435973837, %v698_v3  ;;  %v2408_v10 = vmul.u32.u64.high 3435973837, %v698_v3, %v2407_v9 }
 0x176   : > { %v446_v22 = vadd.f32 %v2368_v46, %v445_v21  ;;  %v497_v27 = vmax.f32 %v443_v17, 0.0  ;;  %v746_v11 = vmul.u32 40, %v745_v4  ;;  %v2414_v17 = vsub.s32 %v2390_v61, %v724_v12 }
 0x177   : > { %v500_v26 = vmax.f32 %v454_v20, 0.0  ;;  %v2417_v19 = vadd.s32 48, %v2390_v61  ;;  %v734_v20 = vshrl.u32 %v2408_v10, 5  ;;  %v2531_v4 = vadd.s32 144, %v2390_v61 }
 0x178   : > { %v498_v28 = vmax.f32 %v446_v22, 0.0  ;;  %v2410_v13 = vsub.s32 %v699_v62, %v746_v11  ;;  %v2423_v22 = vadd.s32 32, %v2390_v61  ;;  %vm937_vm2 = vcmp.ne.s32.totalorder %v2414_v17, 0 }
 0x179   : > { %v514_v29 = vpack.c.bf16 %v500_v26, %v499_v25  ;;  %v2429_v26 = vadd.s32 56, %v2390_v61  ;;  %vm957_vm3 = vcmp.lt.s32.totalorder %v2414_v17, 0  ;;  %v2538_v9 = vadd.s32 128, %v2390_v61 }
 0x17a   : > { %v513_v30 = vpack.c.bf16 %v498_v28, %v497_v27  ;;  %v1754_v31 = vpop.f32.mrb[12].mxu0  ;;  %vm939_vm0 = vcmp.ne.s32.totalorder %v2410_v13, 0  ;;  %vm959_vm1 = vcmp.lt.s32.totalorder %v2410_v13, 0  ;;  %v2426_v25 = vadd.s32 40, %v2410_v13  ;;  %vm2453_vm5 = vmand %vm957_vm3, %vm937_vm2 }
 0x17b   : > { %v467_v32 = vadd.f32 %v1754_v31, %v2368_v46  ;;  %v458_v33 = vpop.f32.mrb[13].mxu0  ;;  %v2434_v27 = vmul.u32.u64.low 3435973837, %v2417_v19  ;;  %v2435_v28 = vmul.u32.u64.high 3435973837, %v2417_v19, %v2434_v27  ;;  %vm2437_vm4 = vmand %vm959_vm1, %vm939_vm0  ;;  %v2442_v31 = vadd.s32 40, %v2390_v61 }
 0x17c   : > { %v459_v34 = vadd.f32 %v2368_v46, %v458_v33  ;;  %v1755_v35 = vpop.f32.mrb[14].mxu0  ;;  %1784 = vmatprep.mubr.bf16.mxu1 %v513_v30  ;;  %v735_v30 = vmul.u32 40, %v734_v20  ;;  %v2542_v11 = vmul.u32.u64.low 3435973837, %v2515_v60  ;;  %v2543_v12 = vmul.u32.u64.high 3435973837, %v2515_v60, %v2542_v11 }
 0x17d   : > { %v470_v36 = vadd.f32 %v1755_v35, %v2368_v46  ;;  %v461_v37 = vpop.f32.mrb[15].mxu0  ;;  %1785 = vmatmul.mubr.bf16.gmra.mrb[8].mxu1 %v514_v29  ;;  %v503_v39 = vmax.f32 %v467_v32, 0.0  ;;  %v2445_v32 = vadd.s32 40, %v2414_v17 }
 0x17e   : > { %v462_v38 = vadd.f32 %v2368_v46, %v461_v37  ;;  %v501_v41 = vmax.f32 %v459_v34, 0.0  ;;  %v2450_v34 = vmul.u32.u64.low 3435973837, %v2423_v22  ;;  %v2451_v35 = vmul.u32.u64.high 3435973837, %v2423_v22, %v2450_v34 }
 0x17f   : > { %v504_v40 = vmax.f32 %v470_v36, 0.0  ;;  %v3950_v36 = vmov 0 }
 0x180   : > { %v502_v42 = vmax.f32 %v462_v38, 0.0  ;;  %v2458_v37 = vmul.u32.u64.low 3435973837, %v2429_v26  ;;  %v2459_v38 = vmul.u32.u64.high 3435973837, %v2429_v26, %v2458_v37  ;;  %v767_v62 = vshrl.u32 %v2451_v35, 5 }
 0x181   : > { %v516_v43 = vpack.c.bf16 %v504_v40, %v503_v39  ;;  %v2462_v39 = vadd.s32 80, %v2390_v61  ;;  %v1019_v40 = vsel %vm2437_vm4, %v2426_v25, %v2410_v13 }
 0x182   : > { %v515_v44 = vpack.c.bf16 %v502_v42, %v501_v41  ;;  %v1758_v45 = vpop.f32.mrb[16].mxu0  ;;  %v2469_v41 = vadd.s32 64, %v2390_v61  ;;  %v2471_v42 = vsub.s32 %v698_v3, %v735_v30  ;;  %v800_v2 = vshrl.u32 %v2459_v38, 5 }
 0x183   : > { %v483_v47 = vadd.f32 %v1758_v45, %v2368_v46  ;;  %v474_v48 = vpop.f32.mrb[17].mxu0  ;;  %v2478_v45 = vadd.s32 88, %v2390_v61  ;;  %v768_v20 = vmul.u32 40, %v767_v62 }
 0x184   : > { %v475_v49 = vadd.f32 %v2368_v46, %v474_v48  ;;  %v1759_v50 = vpop.f32.mrb[18].mxu0  ;;  %1788 = vmatprep.mubr.bf16.mxu1 %v515_v44  ;;  %v2487_v48 = vadd.s32 72, %v2390_v61  ;;  %v801_v30 = vmul.u32 40, %v800_v2  ;;  %vm938_vm9 = vcmp.ne.s32.totalorder %v2471_v42, 0 }
 0x185   : > { %v486_v51 = vadd.f32 %v1759_v50, %v2368_v46  ;;  %v477_v52 = vpop.f32.mrb[19].mxu0  ;;  %1789 = vmatmul.mubr.bf16.gmra.mrb[12].mxu1 %v516_v43  ;;  %v507_v54 = vmax.f32 %v483_v47, 0.0  ;;  %v2474_v43 = vmul.u32.u64.low 3435973837, %v2442_v31  ;;  %v2475_v44 = vmul.u32.u64.high 3435973837, %v2442_v31, %v2474_v43 }
 0x186   : > { %v478_v53 = vadd.f32 %v2368_v46, %v477_v52  ;;  %v505_v56 = vmax.f32 %v475_v49, 0.0  ;;  %v700_v46 = vadd.s32 24, %v2390_v61  ;;  %v1017_v47 = vsel %vm2453_vm5, %v2445_v32, %v2414_v17 }
 0x187   : > { %v508_v55 = vmax.f32 %v486_v51, 0.0  ;;  %v2493_v50 = vmul.u32.u64.low 3435973837, %v2462_v39  ;;  %v2494_v51 = vmul.u32.u64.high 3435973837, %v2462_v39, %v2493_v50  ;;  %v2497_v52 = vadd.s32 112, %v2390_v61 }
 0x188   : > { %v506_v57 = vmax.f32 %v478_v53, 0.0  ;;  %v2403_v6 = vmul.u32.u64.low 3435973837, %v700_v46  ;;  %v2404_v7 = vmul.u32.u64.high 3435973837, %v700_v46, %v2403_v6  ;;  %v789_v53 = vshrl.u32 %v2435_v28, 5 }
 0x189   : > { %v518_v58 = vpack.c.bf16 %v508_v55, %v507_v54  ;;  %v2501_v54 = vmul.u32.u64.low 3435973837, %v2469_v41  ;;  %v2502_v55 = vmul.u32.u64.high 3435973837, %v2469_v41, %v2501_v54  ;;  %v778_v10 = vshrl.u32 %v2475_v44, 5 }
 0x18a   : > { %v517_v59 = vpack.c.bf16 %v506_v57, %v505_v56  ;;  %v756_v14 = vshrl.u32 %v2404_v7, 5  ;;  %v2505_v56 = vadd.s32 96, %v2390_v61  ;;  %v2508_v57 = vadd.s32 40, %v2471_v42 }
 0x18b   : > { %v2519_v63 = vmul.u32.u64.low 3435973837, %v2487_v48  ;;  %v2520_v0 = vmul.u32.u64.high 3435973837, %v2487_v48, %v2519_v63  ;;  %v790_v6 = vmul.u32 40, %v789_v53  ;;  %v2553_v28 = vadd.s32 136, %v2390_v61 }
 0x18c   : > { %1792 = vmatprep.mubr.bf16.mxu1 %v517_v59  ;;  %v757_v21 = vmul.u32 40, %v756_v14  ;;  %v2534_v7 = vmul.u32.u64.low 3435973837, %v2505_v56  ;;  %v2535_v8 = vmul.u32.u64.high 3435973837, %v2505_v56, %v2534_v7  ;;  %v2546_v14 = vadd.s32 152, %v2390_v61 }
 0x18d   : > { %1793 = vmatmul.mubr.bf16.gmra.mrb[16].mxu1 %v518_v58  ;;  %v2511_v58 = vmul.u32.u64.low 3435973837, %v2478_v45  ;;  %v2512_v59 = vmul.u32.u64.high 3435973837, %v2478_v45, %v2511_v58  ;;  %v833_v34 = vshrl.u32 %v2494_v51, 5  ;;  %vm958_vm10 = vcmp.lt.s32.totalorder %v2471_v42, 0 }
 0x18e   : > { %v2447_v33 = vsub.s32 %v700_v46, %v757_v21  ;;  %v2527_v46 = vmul.u32.u64.low 3435973837, %v2497_v52  ;;  %v2528_v3 = vmul.u32.u64.high 3435973837, %v2497_v52, %v2527_v46  ;;  %v2571_v43 = vsub.s32 %v2417_v19, %v790_v6  ;;  %vm2636_vm3 = vmand %vm958_vm10, %vm938_vm9 }
 0x18f   : > { %v2549_v21 = vmul.u32.u64.low 3435973837, %v2523_v1  ;;  %v2550_v27 = vmul.u32.u64.high 3435973837, %v2523_v1, %v2549_v21  ;;  %v2557_v35 = vmul.u32.u64.low 3435973837, %v2531_v4  ;;  %v2558_v37 = vmul.u32.u64.high 3435973837, %v2531_v4, %v2557_v35 }
 0x190   : > { %vm940_vm6 = vcmp.ne.s32.totalorder %v2447_v33, 0  ;;  %vm960_vm7 = vcmp.lt.s32.totalorder %v2447_v33, 0  ;;  %v2490_v49 = vadd.s32 40, %v2447_v33  ;;  %v811_v44 = vshrl.u32 %v2502_v55, 5 }
 0x191   : > { %vm2564_vm8 = vmand %vm960_vm7, %vm940_vm6  ;;  %v2575_v50 = vmul.u32.u64.low 3435973837, %v2538_v9  ;;  %v2576_v51 = vmul.u32.u64.high 3435973837, %v2538_v9, %v2575_v50  ;;  %v779_v53 = vmul.u32 40, %v778_v10  ;;  %v844_v54 = vshrl.u32 %v2512_v59, 5 }
 0x192   : > { %v2580_v58 = vmul.u32.u64.low 3435973837, %v2546_v14  ;;  %v2581_v62 = vmul.u32.u64.high 3435973837, %v2546_v14, %v2580_v58  ;;  %v2584_v63 = vsub.s32 %v2423_v22, %v768_v20  ;;  %v822_v2 = vshrl.u32 %v2520_v0, 5 }
 0x193   : > { %v2588_v19 = vmul.u32.u64.low 3435973837, %v2553_v28  ;;  %v2589_v46 = vmul.u32.u64.high 3435973837, %v2553_v28, %v2588_v19  ;;  %v1020_v55 = vsel %vm2564_vm8, %v2490_v49, %v2447_v33  ;;  %v2596_v59 = vsub.s32 %v2429_v26, %v801_v30 }
 0x194   : > { %v834_v6 = vmul.u32 40, %v833_v34  ;;  %v877_v7 = vshrl.u32 %v2528_v3, 5  ;;  %vm943_vm11 = vcmp.ne.s32.totalorder %v2571_v43, 0  ;;  %vm963_vm12 = vcmp.lt.s32.totalorder %v2571_v43, 0 }
 0x195   : > { %v812_v22 = vmul.u32 40, %v811_v44  ;;  %v855_v0 = vshrl.u32 %v2535_v8, 5  ;;  %v2603_v10 = vadd.s32 40, %v2571_v43  ;;  %v2606_v11 = vsub.s32 %v2442_v31, %v779_v53  ;;  %vm2649_vm2 = vmand %vm963_vm12, %vm943_vm11 }
 0x196   : > { %v845_v20 = vmul.u32 40, %v844_v54  ;;  %v888_v26 = vshrl.u32 %v2543_v12, 5  ;;  %vm941_vm13 = vcmp.ne.s32.totalorder %v2584_v63, 0  ;;  %vm961_vm14 = vcmp.lt.s32.totalorder %v2584_v63, 0 }
 0x197   : > { %v823_v3 = vmul.u32 40, %v822_v2  ;;  %v866_v21 = vshrl.u32 %v2550_v27, 5  ;;  %vm944_vm15 = vcmp.ne.s32.totalorder %v2596_v59, 0  ;;  %v2614_v8 = vsub.s32 %v2462_v39, %v834_v6  ;;  %vm2662_vm7 = vmand %vm961_vm14, %vm941_vm13 }
 0x198   : > { %v878_v30 = vmul.u32 40, %v877_v7  ;;  %v921_v34 = vshrl.u32 %v2558_v37, 5  ;;  %vm964_vm0 = vcmp.lt.s32.totalorder %v2596_v59, 0  ;;  %v2619_v31 = vsub.s32 %v2469_v41, %v812_v22 }
 0x199   : > { %v856_v12 = vmul.u32 40, %v855_v0  ;;  %v899_v35 = vshrl.u32 %v2576_v51, 5  ;;  %vm942_vm1 = vcmp.ne.s32.totalorder %v2606_v11, 0  ;;  %v2624_v27 = vsub.s32 %v2478_v45, %v845_v20  ;;  %vm2670_vm11 = vmand %vm964_vm0, %vm944_vm15 }
 0x19a   : > { %v889_v44 = vmul.u32 40, %v888_v26  ;;  %v932_v39 = vshrl.u32 %v2581_v62, 5  ;;  %v2629_v37 = vsub.s32 %v2487_v48, %v823_v3  ;;  %v867_v50 = vmul.u32 40, %v866_v21 }
 0x19b   : > { %v910_v41 = vshrl.u32 %v2589_v46, 5  ;;  %vm947_vm6 = vcmp.ne.s32.totalorder %v2614_v8, 0  ;;  %v2643_v45 = vsub.s32 %v2497_v52, %v878_v30  ;;  %v922_v48 = vmul.u32 40, %v921_v34 }
 0x19c   : > { %3913 = vst [vmem:[#allocation12_spill] sm:$0xff] %v2629_v37  ;;  %v3916_v53 = vmov 0  ;;  %vm945_vm9 = vcmp.ne.s32.totalorder %v2619_v31, 0  ;;  %v2656_v54 = vsub.s32 %v2505_v56, %v856_v12  ;;  %v900_v58 = vmul.u32 40, %v899_v35 }
 0x19d   : > { %v3917_v53 = vsel %vm2649_vm2, 4294967295, %v3916_v53  ;;  %vm3922_vm12 = vcmp.lt.s32.totalorder %v2606_v11, 0  ;;  %vm948_vm13 = vcmp.ne.s32.totalorder %v2624_v27, 0  ;;  %v2685_v2 = vsub.s32 %v2515_v60, %v889_v44 }
 0x19e   : > { %vm2678_vm10 = vmand %vm3922_vm12, %vm942_vm1  ;;  %v933_v19 = vmul.u32 40, %v932_v39  ;;  %vm3926_vm15 = vcmp.lt.s32.totalorder %v2614_v8, 0  ;;  %vm946_vm1 = vcmp.ne.s32.totalorder %v2629_v37, 0  ;;  %v2698_v6 = vsub.s32 %v2523_v1, %v867_v50 }
 0x19f   : > { %3925 = vst [vmem:[#allocation13_spill] sm:$0xff] %v2685_v2  ;;  %vm2691_vm0 = vmand %vm3926_vm15, %vm947_vm6  ;;  %v911_v7 = vmul.u32 40, %v910_v41  ;;  %vm2705_vm14 = vcmp.lt.s32.totalorder %v1019_v40, 36  ;;  %v1018_v22 = vsel %vm2636_vm3, %v2508_v57, %v2471_v42  ;;  %vm3932_vm6 = vcmp.lt.s32.totalorder %v2619_v31, 0 }
 0x1a0   : > { %3929 = vst [vmem:[#allocation14_spill] sm:$0xff] %v2698_v6  ;;  %vm2717_vm15 = vmand %vm3932_vm6, %vm945_vm9  ;;  %v2724_v13 = vsub.s32 %v2531_v4, %v922_v48  ;;  %vm3936_vm3 = vcmp.lt.s32.totalorder %v2624_v27, 0  ;;  %v2741_v40 = vsub.s32 %v2538_v9, %v900_v58  ;;  %vm2748_vm12 = vcmp.lt.s32.totalorder %v1017_v47, 36 }
 0x1a1   : > { %vm2734_vm9 = vmand %vm3936_vm3, %vm948_vm13  ;;  %v3940_v42 = vmov 0  ;;  %vm2757_vm13 = vcmp.lt.s32.totalorder %v1020_v55, 36  ;;  %v3942_v57 = vmov 0  ;;  %v2762_v4 = vadd.s32 40, %v2584_v63 }
 0x1a2   : > { %3935 = vst [vmem:[#allocation15_spill] sm:$0xff] %v2724_v13  ;;  %3939 = vst [vmem:[#allocation16_spill] sm:$0xff] %v2741_v40  ;;  %v3941_v42 = vsel %vm2748_vm12, 4294967295, %v3940_v42  ;;  %v3943_v57 = vsel %vm2757_vm13, 4294967295, %v3942_v57  ;;  %vm3944_vm5 = vcmp.lt.s32.totalorder %v2629_v37, 0  ;;  %vm972_vm6 = vcmp.lt.s32.totalorder %v2685_v2, 0 }
 0x1a3   : > { %vm2768_vm3 = vmand %vm3944_vm5, %vm946_vm1  ;;  %v2775_v32 = vsub.s32 %v2546_v14, %v933_v19  ;;  %v2778_v33 = vadd.s32 40, %v2596_v59  ;;  %vm3948_vm8 = vcmp.ne.s32.totalorder %v2643_v45, 0  ;;  %vm3949_vm13 = vcmp.lt.s32.totalorder %v2643_v45, 0  ;;  %v2909_v19 = vld [vmem:[%s3860_s4] ss:$0 sm:$0xff] }
 0x1a4   : > { %vm2784_vm12 = vmand %vm3949_vm13, %vm3948_vm8  ;;  %v2791_v47 = vsub.s32 %v2553_v28, %v911_v7  ;;  %v2794_v49 = vadd.s32 40, %v2606_v11  ;;  %v2797_v9 = vadd.s32 40, %v2614_v8  ;;  %vm3953_vm4 = vcmp.ne.s32.totalorder %v2656_v54, 0 }
 0x1a5   : > { %3947 = vst [vmem:[#allocation17_spill] sm:$0xff] %v2775_v32  ;;  %v3951_v36 = vsel %vm2784_vm12, 4294967295, %v3950_v36  ;;  %vm3954_vm13 = vcmp.lt.s32.totalorder %v2656_v54, 0  ;;  %v3955_v14 = vmov 0  ;;  %v2810_v28 = vadd.s32 40, %v2619_v31 }
 0x1a6   : > { %3952 = vst [vmem:[#allocation18_spill] sm:$0xff] %v2791_v47  ;;  %vm2803_vm8 = vmand %vm3954_vm13, %vm3953_vm4  ;;  %v2813_v38 = vadd.s32 40, %v2624_v27  ;;  %vm3957_vm2 = vcmp.ne.s32.totalorder %v2685_v2, 0  ;;  %v3958_v55 = vmov 0  ;;  %v3961_v0 = vmov 0 }
 0x1a7   : > { %v3956_v14 = vsel %vm2803_vm8, 4294967295, %v3955_v14  ;;  %vm2817_vm12 = vmand %vm972_vm6, %vm3957_vm2  ;;  %vm2824_vm8 = vcmp.lt.s32.totalorder %v1018_v22, 36  ;;  %v2829_v20 = vadd.s32 40, %v2629_v37  ;;  %v2832_v26 = vadd.s32 40, %v2643_v45 }
 0x1a8   : > { %v3959_v55 = vsel %vm2817_vm12, 4294967295, %v3958_v55  ;;  %v3962_v0 = vsel %vm2824_vm8, 4294967295, %v3961_v0  ;;  %vm3963_vm2 = vcmp.ne.s32.totalorder %v2698_v6, 0  ;;  %vm3964_vm6 = vcmp.lt.s32.totalorder %v2698_v6, 0 }
 0x1a9   : > { %3960 = vst [vmem:[#allocation19_spill] sm:$0xff] %v3959_v55  ;;  %vm2838_vm5 = vmand %vm3964_vm6, %vm3963_vm2  ;;  %v3965_v3 = vmov 0  ;;  %v2848_v21 = vadd.s32 40, %v2656_v54  ;;  %v2851_v30 = vadd.s32 40, %v2685_v2  ;;  %vm3969_vm2 = vcmp.ne.s32.totalorder %v2724_v13, 0 }
 0x1aa   : > { %v3966_v3 = vsel %vm2838_vm5, 4294967295, %v3965_v3  ;;  %vm3970_vm6 = vcmp.lt.s32.totalorder %v2724_v13, 0  ;;  %v3971_v34 = vmov 0  ;;  %vm954_vm4 = vcmp.ne.s32.totalorder %v2791_v47, 0 }
 0x1ab   : > { %3967 = vst [vmem:[#allocation20_spill] sm:$0xff] %v3966_v3  ;;  %3968 = vst [vmem:[#allocation21_spill] sm:$0xff] %v2851_v30  ;;  %vm974_vm8 = vcmp.lt.s32.totalorder %v2791_v47, 0  ;;  %v2864_v12 = vadd.s32 40, %v2698_v6  ;;  %v2867_v35 = vadd.s32 40, %v2724_v13  ;;  %vm3976_vm12 = vcmp.ne.s32.totalorder %v2741_v40, 0 }
 0x1ac   : > { %vm2857_vm5 = vmand %vm3970_vm6, %vm3969_vm2  ;;  %vm3977_vm13 = vcmp.lt.s32.totalorder %v2741_v40, 0  ;;  %v3978_v44 = vmov 0  ;;  %v2878_v39 = vadd.s32 40, %v2741_v40  ;;  %v2881_v50 = vadd.s32 40, %v2775_v32 }
 0x1ad   : > { %v3972_v34 = vsel %vm2857_vm5, 4294967295, %v3971_v34  ;;  %3974 = vst [vmem:[#allocation23_spill] sm:$0xff] %v2864_v12  ;;  %3975 = vst [vmem:[#allocation24_spill] sm:$0xff] %v2867_v35  ;;  %v1021_v41 = vsel %vm2662_vm7, %v2762_v4, %v2584_v63  ;;  %v3985_v58 = vmov 0  ;;  %v2904_v63 = vadd.s32 40, %v2791_v47 }
 0x1ae   : > { %3973 = vst [vmem:[#allocation22_spill] sm:$0xff] %v3972_v34  ;;  %vm2873_vm1 = vmand %vm3977_vm13, %vm3976_vm12  ;;  %vm3983_vm12 = vcmp.ne.s32.totalorder %v2775_v32, 0  ;;  %vm3984_vm13 = vcmp.lt.s32.totalorder %v2775_v32, 0  ;;  %v3989_v7 = vmov 0  ;;  %vm3992_vm6 = vnez %v3951_v36  ;;  %v3011_v47 = vld [vmem:[%s3860_s4 + $0x1] ss:$0 sm:$0xff] }
 0x1af   : > { %v3979_v44 = vsel %vm2873_vm1, 4294967295, %v3978_v44  ;;  %3981 = vst [vmem:[#allocation26_spill] sm:$0xff] %v2878_v39  ;;  %3982 = vst [vmem:[#allocation27_spill] sm:$0xff] %v2881_v50  ;;  %vm2986_vm5 = vcmp.lt.s32.totalorder %v1021_v41, 36  ;;  %v3024_v32 = vld [vmem:[%s3860_s4 + $0x3] ss:$0 sm:$0xff] }
 0x1b0   : > { %3980 = vst [vmem:[#allocation25_spill] sm:$0xff] %v3979_v44  ;;  %vm2899_vm2 = vmand %vm3984_vm13, %vm3983_vm12  ;;  %vm3993_vm12 = vnez %v3956_v14  ;;  %vm4001_vm13 = vnez %v3943_v57  ;;  %vm4013_vm1 = vcmp.lt.s32.totalorder %v2390_v61, 4 }
 0x1b1   : > { %v3986_v58 = vsel %vm2899_vm2, 4294967295, %v3985_v58  ;;  %3988 = vst [vmem:[#allocation29_spill] sm:$0xff] %v2904_v63  ;;  %vm2931_vm7 = vmand %vm974_vm8, %vm954_vm4  ;;  %vm3994_vm8 = vnez %v3959_v55  ;;  %v3016_v63 = vld [vmem:[%s3860_s4 + $0x2] ss:$0 sm:$0xff]  ;;  %vm4011_vm2 = vcmp.lt.s32.totalorder %v2390_v61, 3 }
 0x1b2   : > { %3987 = vst [vmem:[#allocation28_spill] sm:$0xff] %v3986_v58  ;;  %v3990_v7 = vsel %vm2931_vm7, 4294967295, %v3989_v7  ;;  %vm4009_vm7 = vcmp.lt.s32.totalorder %v2390_v61, 2 }
 0x1b3   : > { %3991 = vst [vmem:[#allocation30_spill] sm:$0xff] %v3990_v7 }
 0x240   : > { %v1778_v52 = vpop.f32.mrb[0].mxu1 }
 0x241   : > { %v2937_v22 = vsel %vm2705_vm14, %v1778_v52, 0.0  ;;  %v617_v51 = vpop.f32.mrb[1].mxu1  ;;  %vm3995_vm14 = vnez %v3917_v53 }
 0x242   : > { %v1779_v37 = vpop.f32.mrb[2].mxu1  ;;  %v3996_v60 = vsel %vm3995_vm14, %v2603_v10, %v2571_v43  ;;  %v1124_v10 = vmul.f32 %v2909_v19, %v2937_v22  ;;  %vm4000_vm14 = vnez %v3941_v42  ;;  %v1144_v53 = vrot.slane %v2937_v22, 7 }
 0x243   : > { %vm2956_vm4 = vcmp.lt.s32.totalorder %v3996_v60, 36  ;;  %v2980_v60 = vsel %vm4000_vm14, %v617_v51, 0.0  ;;  %v2984_v25 = vsel %vm4001_vm13, %v1779_v37, 0.0  ;;  %v620_v48 = vpop.f32.mrb[3].mxu1  ;;  %v1230_v42 = vrot.slane %v2937_v22, 6 }
 0x244   : > { %v1316_v51 = vrot.slane %v2937_v22, 5  ;;  %v1402_v57 = vrot.slane %v2937_v22, 4  ;;  %v3000_v37 = vadd.f32 %v2937_v22, %v2333_v15  ;;  %v3004_v41 = vmul.f32 %v2909_v19, %v2980_v60 }
 0x245   : > { %v1125_v50 = vmul.f32 %v2909_v19, %v2984_v25  ;;  %v4005_v58 = vrot.slane %v2984_v25, 7  ;;  %vm4006_vm13 = vcmp.lt.s32.totalorder %v2390_v61, 1  ;;  %vm4007_vm14 = vnez %v3962_v0  ;;  %v3052_v0 = vld [vmem:[%s3860_s4 + $0x4] ss:$0 sm:$0xff] }
 0x246   : > { %4004 = vst [vmem:[#allocation31_spill] sm:$0xff] %v3004_v41  ;;  %v1098_v41 = vsel %vm4007_vm14, %v620_v48, 0.0  ;;  %v4008_v40 = vrot.slane %v2984_v25, 6  ;;  %v4010_v7 = vrot.slane %v2984_v25, 5  ;;  %v4012_v44 = vrot.slane %v2984_v25, 4 }
 0x247   : > { %v1179_v15 = vsel %vm4006_vm13, %v1144_v53, %v4005_v58  ;;  %v1143_v6 = vrot.slane %v1098_v41, 7  ;;  %v1229_v12 = vrot.slane %v1098_v41, 6  ;;  %v1123_v30 = vmul.f32 %v2909_v19, %v1098_v41 }
 0x248   : > { %v1191_v22 = vmul.f32 %v3011_v47, %v1179_v15  ;;  %v1265_v43 = vsel %vm4009_vm7, %v1230_v42, %v4008_v40  ;;  %v1351_v39 = vsel %vm4011_vm2, %v1316_v51, %v4010_v7  ;;  %v1437_v58 = vsel %vm4013_vm1, %v1402_v57, %v4012_v44  ;;  %v1782_v48 = vpop.f32.mrb[4].mxu1  ;;  %vm4017_vm2 = vmmov %vm4006_vm13 }
 0x249   : > { %v1277_v40 = vmul.f32 %v3016_v63, %v1265_v43  ;;  %v1363_v13 = vmul.f32 %v3024_v32, %v1351_v39  ;;  %v1489_v7 = vadd.f32 %v2984_v25, %v2336_v16  ;;  %v633_v35 = vpop.f32.mrb[5].mxu1  ;;  %v1315_v44 = vrot.slane %v1098_v41, 5  ;;  %vm4019_vm7 = vmmov %vm4017_vm2 }
 0x24a   : > { %v1211_v34 = vadd.f32 %v1191_v22, %v1125_v50  ;;  %v1783_v3 = vpop.f32.mrb[6].mxu1  ;;  %v1449_v2 = vmul.f32 %v3052_v0, %v1437_v58  ;;  %v1401_v55 = vrot.slane %v1098_v41, 4  ;;  %v1487_v15 = vadd.f32 %v1098_v41, %v2329_v5 }
 0x24b   : > { %v4014_v39 = vsel %vm2670_vm11, %v2778_v33, %v2596_v59  ;;  %v3071_v50 = vpop.f32.mrb[7].mxu1  ;;  %v1180_v22 = vsel %vm4017_vm2, %v1143_v6, %v1144_v53  ;;  %v4018_v58 = vrot.slane %v2980_v60, 7  ;;  %vm4020_vm13 = vcmp.lt.s32.totalorder %v2390_v61, 2 }
 0x24c   : > { %vm3067_vm1 = vcmp.lt.s32.totalorder %v4014_v39, 36  ;;  %v1297_v43 = vadd.f32 %v1277_v40, %v1211_v34  ;;  %v1266_v62 = vsel %vm4020_vm13, %v1229_v12, %v1230_v42  ;;  %v1190_v33 = vmul.f32 %v3011_v47, %v1180_v22  ;;  %vm4022_vm11 = vmmov %vm4020_vm13 }
 0x24d   : > { %v1181_v5 = vsel %vm4019_vm7, %v4018_v58, %v1143_v6  ;;  %v4021_v41 = vrot.slane %v2980_v60, 6  ;;  %v3089_v53 = vsel %vm2956_vm4, %v1782_v48, 0.0  ;;  %vm4023_vm14 = vcmp.lt.s32.totalorder %v2390_v61, 3  ;;  %vm4035_vm13 = vmmov %vm4022_vm11 }
 0x24e   : > { %v1189_v59 = vmul.f32 %v3011_v47, %v1181_v5  ;;  %v1383_v40 = vadd.f32 %v1363_v13, %v1297_v43  ;;  %v1352_v6 = vsel %vm4023_vm14, %v1315_v44, %v1316_v51  ;;  %v4024_v39 = vrot.slane %v2980_v60, 5  ;;  %vm4025_vm2 = vmmov %vm4023_vm14 }
 0x24f   : > { %v1267_v34 = vsel %vm4022_vm11, %v4021_v41, %v1229_v12  ;;  %v3099_v22 = vsel %vm2986_vm5, %v633_v35, 0.0  ;;  %v1210_v5 = vadd.f32 %v1190_v33, %v1124_v10  ;;  %v1276_v52 = vmul.f32 %v3016_v63, %v1266_v62  ;;  %vm4037_vm11 = vmmov %vm4025_vm2 }
 0x250   : > { %v1353_v42 = vsel %vm4025_vm2, %v4024_v39, %v1315_v44  ;;  %v1209_v58 = vadd.f32 %v1189_v59, %v1123_v30  ;;  %v1275_v12 = vmul.f32 %v3016_v63, %v1267_v34  ;;  %v4026_v13 = vsel %vm2678_vm10, %v2794_v49, %v2606_v11  ;;  %v3119_v44 = vpop.f32.mrb[8].mxu1 }
 0x251   : > { %vm3108_vm4 = vcmp.lt.s32.totalorder %v4026_v13, 36  ;;  %v1469_v48 = vadd.f32 %v1449_v2, %v1383_v40  ;;  %v1361_v4 = vmul.f32 %v3024_v32, %v1353_v42  ;;  %vm4029_vm5 = vcmp.lt.s32.totalorder %v2390_v61, 4  ;;  %v3126_v43 = vpop.f32.mrb[9].mxu1 }
 0x252   : > { %v1438_v30 = vsel %vm4029_vm5, %v1401_v55, %v1402_v57  ;;  %v4030_v35 = vrot.slane %v2980_v60, 4  ;;  %vm4031_vm7 = vmmov %vm4029_vm5  ;;  %v1295_v56 = vadd.f32 %v1275_v12, %v1209_v58  ;;  %v1296_v11 = vadd.f32 %v1276_v52, %v1210_v5  ;;  %v3131_v33 = vpop.f32.mrb[10].mxu1 }
 0x253   : > { %v1362_v49 = vmul.f32 %v3024_v32, %v1352_v6  ;;  %v3124_v2 = vmul.f32 %v2909_v19, %v3089_v53  ;;  %v1509_v62 = vadd.f32 %v1489_v7, %v1469_v48  ;;  %v1448_v59 = vmul.f32 %v3052_v0, %v1438_v30  ;;  %v3135_v39 = vpop.f32.mrb[11].mxu1  ;;  %vm4039_vm14 = vmmov %vm4029_vm5 }
 0x254   : > { %v1439_v10 = vsel %vm4031_vm7, %v4030_v35, %v1401_v55  ;;  %v1148_v55 = vrot.slane %v3089_v53, 7  ;;  %v1381_v41 = vadd.f32 %v1361_v4, %v1295_v56  ;;  %v1234_v40 = vrot.slane %v3089_v53, 6 }
 0x255   : > { %v1447_v57 = vmul.f32 %v3052_v0, %v1439_v10  ;;  %v1382_v34 = vadd.f32 %v1362_v49, %v1296_v11  ;;  %v1320_v6 = vrot.slane %v3089_v53, 5  ;;  %1529 = vst [vmem:[%s3139_s6 + $0x18] sm:$0xff] %v1509_v62  ;;  %v1406_v7 = vrot.slane %v3089_v53, 4 }
 0x256   : > { %v1146_v42 = vrot.slane %v3099_v22, 7  ;;  %v1232_v58 = vrot.slane %v3099_v22, 6  ;;  %v1318_v5 = vrot.slane %v3099_v22, 5  ;;  %v3148_v13 = vadd.f32 %v3089_v53, %v2346_v23 }
 0x257   : > { %v1467_v12 = vadd.f32 %v1447_v57, %v1381_v41  ;;  %v1468_v52 = vadd.f32 %v1448_v59, %v1382_v34  ;;  %v1404_v48 = vrot.slane %v3099_v22, 4  ;;  %v4032_v4 = vrot.slane %v2984_v25, 7 }
 0x258   : > { %vm4033_vm10 = vcmp.lt.s32.totalorder %v2390_v61, 1  ;;  %v4034_v35 = vrot.slane %v2984_v25, 6  ;;  %v4036_v56 = vrot.slane %v2984_v25, 5  ;;  %v3167_v11 = vsel %vm3067_vm1, %v1783_v3, 0.0 }
 0x259   : > { %v1178_v30 = vsel %vm4033_vm10, %v4032_v4, %v1146_v42  ;;  %v1507_v49 = vadd.f32 %v1487_v15, %v1467_v12  ;;  %v1508_v62 = vadd.f32 %v3000_v37, %v1468_v52  ;;  %v1126_v57 = vmul.f32 %v2909_v19, %v3099_v22  ;;  %v3183_v37 = vpop.f32.mrb[12].mxu1  ;;  %vm4040_vm1 = vmmov %vm4033_vm10 }
 0x25a   : > { %v1264_v10 = vsel %vm4035_vm13, %v4034_v35, %v1232_v58  ;;  %v1350_v23 = vsel %vm4037_vm11, %v4036_v56, %v1318_v5  ;;  %v1192_v59 = vmul.f32 %v3011_v47, %v1178_v30  ;;  %v4038_v34 = vrot.slane %v2984_v25, 4  ;;  %v3190_v25 = vpop.f32.mrb[13].mxu1  ;;  %vm4051_vm10 = vmmov %vm4040_vm1 }
 0x25b   : > { %v1278_v41 = vmul.f32 %v3016_v63, %v1264_v10  ;;  %v1490_v3 = vadd.f32 %v3099_v22, %v2339_v18  ;;  %v3895_v15 = vrot.slane %v3167_v11, 7  ;;  %1527 = vst [vmem:[%s3139_s6 + $0x8] sm:$0xff] %v1507_v49  ;;  %1528 = vst [vmem:[%s3139_s6 + $0x10] sm:$0xff] %v1508_v62  ;;  %v1364_v12 = vmul.f32 %v3024_v32, %v1350_v23  ;;  %v3222_v51 = vpop.f32.mrb[14].mxu1 }
 0x25c   : > { %v1436_v4 = vsel %vm4039_vm14, %v4038_v34, %v1404_v48  ;;  %v1212_v16 = vadd.f32 %v1192_v59, %v1126_v57  ;;  %v3894_v52 = vrot.slane %v3167_v11, 6  ;;  %v3893_v30 = vrot.slane %v3167_v11, 5  ;;  %v3237_v1 = vpop.f32.mrb[15].mxu1 }
 0x25d   : > { %v1129_v35 = vmul.f32 %v2909_v19, %v3167_v11  ;;  %v1175_v18 = vsel %vm4040_vm1, %v1148_v55, %v3895_v15  ;;  %v3896_v10 = vrot.slane %v3167_v11, 4  ;;  %v1102_v56 = vsel %vm3108_vm4, %v3071_v50, 0.0  ;;  %vm4049_vm4 = vmmov %vm4031_vm7 }
 0x25e   : > { %v4041_v23 = vsel %vm2691_vm0, %v2797_v9, %v2614_v8  ;;  %v4044_v62 = vsel %vm2717_vm15, %v2810_v28, %v2619_v31  ;;  %v1298_v50 = vadd.f32 %v1278_v41, %v1212_v16  ;;  %v1195_v46 = vmul.f32 %v3011_v47, %v1175_v18  ;;  %vm4047_vm0 = vmmov %vm4035_vm13 }
 0x25f   : > { %vm3209_vm2 = vcmp.lt.s32.totalorder %v4041_v23, 36  ;;  %vm3218_vm5 = vcmp.lt.s32.totalorder %v4044_v62, 36  ;;  %v1261_v8 = vsel %vm4047_vm0, %v1234_v40, %v3894_v52  ;;  %vm4048_vm15 = vmmov %vm4037_vm11  ;;  %v1450_v9 = vmul.f32 %v3052_v0, %v1436_v4 }
 0x260   : > { %v1347_v31 = vsel %vm4048_vm15, %v1320_v6, %v3893_v30  ;;  %v1281_v28 = vmul.f32 %v3016_v63, %v1261_v8  ;;  %v1433_v41 = vsel %vm4049_vm4, %v1406_v7, %v3896_v10  ;;  %v1384_v34 = vadd.f32 %v1364_v12, %v1298_v50  ;;  %vm4050_vm7 = vmmov %vm4040_vm1 }
 0x261   : > { %v1367_v59 = vmul.f32 %v3024_v32, %v1347_v31  ;;  %v1215_v16 = vadd.f32 %v1195_v46, %v1129_v35  ;;  %v1127_v18 = vmul.f32 %v2909_v19, %v1102_v56  ;;  %v1147_v23 = vrot.slane %v1102_v56, 7  ;;  %vm4055_vm11 = vmmov %vm4047_vm0 }
 0x262   : > { %v1453_v62 = vmul.f32 %v3052_v0, %v1433_v41  ;;  %v1233_v30 = vrot.slane %v1102_v56, 6  ;;  %v1319_v4 = vrot.slane %v1102_v56, 5  ;;  %v1405_v52 = vrot.slane %v1102_v56, 4  ;;  %vm4056_vm14 = vmmov %vm4047_vm0 }
 0x263   : > { %v1470_v8 = vadd.f32 %v1450_v9, %v1384_v34  ;;  %v1301_v15 = vadd.f32 %v1281_v28, %v1215_v16  ;;  %v1176_v31 = vsel %vm4050_vm7, %v1147_v23, %v1148_v55  ;;  %v1177_v10 = vsel %vm4051_vm10, %v1146_v42, %v1147_v23  ;;  %v3273_v42 = vpop.f32.mrb[16].mxu1  ;;  %vm4059_vm0 = vmmov %vm4049_vm4 }
 0x264   : > { %v4052_v12 = vsel %vm2734_vm9, %v2813_v38, %v2624_v27  ;;  %v1193_v50 = vmul.f32 %v3011_v47, %v1177_v10  ;;  %v1194_v46 = vmul.f32 %v3011_v47, %v1176_v31  ;;  %v1262_v55 = vsel %vm4055_vm11, %v1233_v30, %v1234_v40  ;;  %v3277_v41 = vpop.f32.mrb[17].mxu1  ;;  %vm4057_vm9 = vmmov %vm4048_vm15 }
 0x265   : > { %vm3261_vm13 = vcmp.lt.s32.totalorder %v4052_v12, 36  ;;  %v1263_v29 = vsel %vm4056_vm14, %v1232_v58, %v1233_v30  ;;  %v1510_v27 = vadd.f32 %v1490_v3, %v1470_v8  ;;  %v1387_v38 = vadd.f32 %v1367_v59, %v1301_v15  ;;  %vm4058_vm1 = vmmov %vm4057_vm9  ;;  %v3288_v3 = vpop.f32.mrb[18].mxu1 }
 0x266   : > { %v1279_v9 = vmul.f32 %v3016_v63, %v1263_v29  ;;  %v1280_v28 = vmul.f32 %v3016_v63, %v1262_v55  ;;  %v1213_v10 = vadd.f32 %v1193_v50, %v1127_v18  ;;  %v1214_v34 = vadd.f32 %v1194_v46, %v3124_v2  ;;  %v3307_v18 = vpop.f32.mrb[19].mxu1  ;;  %vm4064_vm4 = vmmov %vm4059_vm0 }
 0x267   : > { %v1348_v40 = vsel %vm4057_vm9, %v1319_v4, %v1320_v6  ;;  %v1349_v58 = vsel %vm4058_vm1, %v1318_v5, %v1319_v4  ;;  %1530 = vst [vmem:[%s3139_s6 + $0x20] sm:$0xff] %v1510_v27  ;;  %v1473_v15 = vadd.f32 %v1453_v62, %v1387_v38  ;;  %v1493_v30 = vadd.f32 %v3167_v11, %v2349_v24  ;;  %v4060_v6 = vld [vmem:[#allocation12_spill] sm:$0xff]  ;;  %vm4079_vm14 = vmmov %vm4059_vm0 }
 0x268   : > { %v1365_v2 = vmul.f32 %v3024_v32, %v1349_v58  ;;  %v1434_v59 = vsel %vm4059_vm0, %v1405_v52, %v1406_v7  ;;  %v4061_v16 = vsel %vm2768_vm3, %v2829_v20, %v4060_v6  ;;  %v1299_v24 = vadd.f32 %v1279_v9, %v1213_v10  ;;  %v1927_v7 = vld [vmem:[%s2317_s16 + $0x28] sm:$0xff] }
 0x269   : > { %vm3303_vm15 = vcmp.lt.s32.totalorder %v4061_v16, 36  ;;  %v1300_v23 = vadd.f32 %v1280_v28, %v1214_v34  ;;  %v1366_v62 = vmul.f32 %v3024_v32, %v1348_v40  ;;  %v1435_v53 = vsel %vm4064_vm4, %v1404_v48, %v1405_v52  ;;  %v1928_v16 = vld [vmem:[%s2317_s16 + $0x40] sm:$0xff] }
 0x26a   : > { %v1513_v17 = vadd.f32 %v1493_v30, %v1473_v15  ;;  %v1491_v4 = vadd.f32 %v1927_v7, %v1102_v56  ;;  %v3318_v20 = vsel %vm3209_vm2, %v3119_v44, 0.0  ;;  %v3323_v8 = vsel %vm3218_vm5, %v3126_v43, 0.0  ;;  %vm4071_vm2 = vmmov %vm4055_vm11 }
 0x26b   : > { %v4065_v22 = vsel %vm3992_vm6, %v2832_v26, %v2643_v45  ;;  %v1385_v52 = vadd.f32 %v1365_v2, %v1299_v24  ;;  %v1386_v56 = vadd.f32 %v1366_v62, %v1300_v23  ;;  %v1451_v49 = vmul.f32 %v3052_v0, %v1435_v53  ;;  %vm4069_vm6 = vmmov %vm4050_vm7 }
 0x26c   : > { %vm3330_vm3 = vcmp.lt.s32.totalorder %v4065_v22, 36  ;;  %v1452_v44 = vmul.f32 %v3052_v0, %v1434_v59  ;;  %1533 = vst [vmem:[%s3139_s6 + $0x38] sm:$0xff] %v1513_v17  ;;  %v3339_v43 = vmul.f32 %v2909_v19, %v3318_v20  ;;  %v1152_v36 = vrot.slane %v3318_v20, 7  ;;  %vm4073_vm5 = vmmov %vm4058_vm1 }
 0x26d   : > { %v1238_v57 = vrot.slane %v3318_v20, 6  ;;  %v1324_v45 = vrot.slane %v3318_v20, 5  ;;  %v1471_v26 = vadd.f32 %v1451_v49, %v1385_v52  ;;  %v1410_v12 = vrot.slane %v3318_v20, 4  ;;  %vm4075_vm7 = vmmov %vm4059_vm0 }
 0x26e   : > { %v1472_v31 = vadd.f32 %v1452_v44, %v1386_v56  ;;  %v1150_v50 = vrot.slane %v3323_v8, 7  ;;  %v1130_v46 = vmul.f32 %v2909_v19, %v3323_v8  ;;  %v1236_v55 = vrot.slane %v3323_v8, 6  ;;  %vm4076_vm10 = vmmov %vm4069_vm6 }
 0x26f   : > { %v1322_v29 = vrot.slane %v3323_v8, 5  ;;  %v1408_v27 = vrot.slane %v3323_v8, 4  ;;  %v1511_v38 = vadd.f32 %v1491_v4, %v1471_v26  ;;  %v4068_v28 = vrot.slane %v3167_v11, 7  ;;  %v1929_v4 = vld [vmem:[%s2317_s16 + $0x58] sm:$0xff]  ;;  %vm4078_vm11 = vmmov %vm4058_vm1 }
 0x270   : > { %v1512_v9 = vadd.f32 %v3148_v13, %v1472_v31  ;;  %v3359_v34 = vsel %vm3261_vm13, %v3131_v33, 0.0  ;;  %v4070_v58 = vrot.slane %v3167_v11, 6  ;;  %v4072_v30 = vrot.slane %v3167_v11, 5  ;;  %vm4077_vm13 = vmmov %vm4071_vm2 }
 0x271   : > { %v1174_v10 = vsel %vm4069_vm6, %v4068_v28, %v1150_v50  ;;  %v4074_v2 = vrot.slane %v3167_v11, 4  ;;  %1531 = vst [vmem:[%s3139_s6 + $0x28] sm:$0xff] %v1511_v38  ;;  %v1494_v24 = vadd.f32 %v1928_v16, %v3323_v8  ;;  %v1153_v62 = vrot.slane %v3359_v34, 7  ;;  %vm4083_vm1 = vmmov %vm4069_vm6 }
 0x272   : > { %v1196_v40 = vmul.f32 %v3011_v47, %v1174_v10  ;;  %v1260_v15 = vsel %vm4071_vm2, %v4070_v58, %v1236_v55  ;;  %v1346_v13 = vsel %vm4073_vm5, %v4072_v30, %v1322_v29  ;;  %1532 = vst [vmem:[%s3139_s6 + $0x30] sm:$0xff] %v1512_v9  ;;  %v1239_v53 = vrot.slane %v3359_v34, 6  ;;  %vm4092_vm4 = vmmov %vm4071_vm2 }
 0x273   : > { %v1432_v33 = vsel %vm4075_vm7, %v4074_v2, %v1408_v27  ;;  %v1282_v35 = vmul.f32 %v3016_v63, %v1260_v15  ;;  %v1368_v59 = vmul.f32 %v3024_v32, %v1346_v13  ;;  %v1325_v11 = vrot.slane %v3359_v34, 5  ;;  %vm4095_vm6 = vmmov %vm4075_vm7 }
 0x274   : > { %v1454_v6 = vmul.f32 %v3052_v0, %v1432_v33  ;;  %v1216_v23 = vadd.f32 %v1196_v40, %v1130_v46  ;;  %v1133_v17 = vmul.f32 %v2909_v19, %v3359_v34  ;;  %v1411_v7 = vrot.slane %v3359_v34, 4  ;;  %v4086_v33 = vld [vmem:[#allocation21_spill] sm:$0xff] }
 0x275   : > { %v1497_v22 = vadd.f32 %v1929_v4, %v3359_v34  ;;  %v1106_v52 = vsel %vm3303_vm15, %v3135_v39, 0.0  ;;  %v1171_v49 = vsel %vm4076_vm10, %v1152_v36, %v1153_v62  ;;  %v1257_v44 = vsel %vm4077_vm13, %v1238_v57, %v1239_v53  ;;  %vm4091_vm15 = vmmov %vm4071_vm2 }
 0x276   : > { %v1302_v56 = vadd.f32 %v1282_v35, %v1216_v23  ;;  %v1343_v26 = vsel %vm4078_vm11, %v1324_v45, %v1325_v11  ;;  %v1199_v39 = vmul.f32 %v3011_v47, %v1171_v49  ;;  %v1285_v5 = vmul.f32 %v3016_v63, %v1257_v44  ;;  %v4087_v35 = vld [vmem:[#allocation13_spill] sm:$0xff]  ;;  %vm4096_vm2 = vmmov %vm4095_vm6 }
 0x277   : > { %v1429_v31 = vsel %vm4079_vm14, %v1410_v12, %v1411_v7  ;;  %v3419_v46 = vsel %vm3330_vm3, %v3183_v37, 0.0  ;;  %v4080_v38 = vsel %vm3993_vm12, %v2848_v21, %v2656_v54  ;;  %v1371_v10 = vmul.f32 %v3024_v32, %v1343_v26  ;;  %vm4084_vm12 = vmmov %vm4083_vm1 }
 0x278   : > { %vm3426_vm9 = vcmp.lt.s32.totalorder %v4080_v38, 36  ;;  %v1388_v28 = vadd.f32 %v1368_v59, %v1302_v56  ;;  %v1457_v40 = vmul.f32 %v3052_v0, %v1429_v31  ;;  %v1151_v58 = vrot.slane %v1106_v52, 7  ;;  %vm4094_vm3 = vmmov %vm4073_vm5  ;;  %v4099_v31 = vld [vmem:[#allocation23_spill] sm:$0xff]  ;;  %v4100_v38 = vld [vmem:[#allocation14_spill] sm:$0xff] }
 0x279   : > { %v1219_v15 = vadd.f32 %v1199_v39, %v1133_v17  ;;  %v1131_v48 = vmul.f32 %v2909_v19, %v1106_v52  ;;  %v1237_v37 = vrot.slane %v1106_v52, 6  ;;  %v1323_v30 = vrot.slane %v1106_v52, 5  ;;  %vm4111_vm11 = vmmov %vm4083_vm1 }
 0x27a   : > { %v1474_v13 = vadd.f32 %v1454_v6, %v1388_v28  ;;  %v1172_v14 = vsel %vm4083_vm1, %v1151_v58, %v1152_v36  ;;  %v1173_v54 = vsel %vm4084_vm12, %v1150_v50, %v1151_v58  ;;  %v1409_v21 = vrot.slane %v1106_v52, 4  ;;  %vm4112_vm14 = vmmov %vm4092_vm4 }
 0x27b   : > { %v4088_v59 = vsel %vm3994_vm8, %v4086_v33, %v4087_v35  ;;  %v1305_v23 = vadd.f32 %v1285_v5, %v1219_v15  ;;  %v1197_v6 = vmul.f32 %v3011_v47, %v1173_v54  ;;  %v1198_v17 = vmul.f32 %v3011_v47, %v1172_v14  ;;  %vm4093_vm8 = vmmov %vm4073_vm5  ;;  %v4104_v14 = vld [vmem:[#allocation22_spill] sm:$0xff]  ;;  %v4106_v54 = vld [vmem:[#allocation24_spill] sm:$0xff] }
 0x27c   : > { %vm3442_vm0 = vcmp.lt.s32.totalorder %v4088_v59, 36  ;;  %v1258_v36 = vsel %vm4091_vm15, %v1237_v37, %v1238_v57  ;;  %v1514_v4 = vadd.f32 %v1494_v24, %v1474_v13  ;;  %v1259_v50 = vsel %vm4092_vm4, %v1236_v55, %v1237_v37  ;;  %vm4114_vm1 = vmmov %vm4096_vm2 }
 0x27d   : > { %v1284_v56 = vmul.f32 %v3016_v63, %v1258_v36  ;;  %v1344_v49 = vsel %vm4093_vm8, %v1323_v30, %v1324_v45  ;;  %v1391_v44 = vadd.f32 %v1371_v10, %v1305_v23  ;;  %v1217_v26 = vadd.f32 %v1197_v6, %v1131_v48  ;;  %vm4115_vm12 = vmmov %vm4111_vm11 }
 0x27e   : > { %v1218_v39 = vadd.f32 %v1198_v17, %v3339_v43  ;;  %v1283_v5 = vmul.f32 %v3016_v63, %v1259_v50  ;;  %1534 = vst [vmem:[%s3139_s6 + $0x40] sm:$0xff] %v1514_v4  ;;  %v1345_v57 = vsel %vm4094_vm3, %v1322_v29, %v1323_v30  ;;  %v1370_v55 = vmul.f32 %v3024_v32, %v1344_v49  ;;  %v4097_v43 = vld [vmem:[#allocation20_spill] sm:$0xff]  ;;  %v1931_v30 = vld [vmem:[%s2317_s16 + $0x48] sm:$0xff]  ;;  %vm4117_vm15 = vmmov %vm4094_vm3 }
 0x27f   : > { %v1430_v24 = vsel %vm4095_vm6, %v1409_v21, %v1410_v12  ;;  %v1431_v45 = vsel %vm4096_vm2, %v1408_v27, %v1409_v21  ;;  %vm4098_vm5 = vnez %v4097_v43  ;;  %v1477_v29 = vadd.f32 %v1457_v40, %v1391_v44  ;;  %v1930_v12 = vld [vmem:[%s2317_s16 + $0x50] sm:$0xff]  ;;  %v4107_v21 = vld [vmem:[#allocation15_spill] sm:$0xff]  ;;  %vm4126_vm6 = vmmov %vm4111_vm11 }
 0x280   : > { %v4101_v28 = vsel %vm4098_vm5, %v4099_v31, %v4100_v38  ;;  %v1303_v58 = vadd.f32 %v1283_v5, %v1217_v26  ;;  %v1304_v15 = vadd.f32 %v1284_v56, %v1218_v39  ;;  %v1369_v48 = vmul.f32 %v3024_v32, %v1345_v57  ;;  %vm4127_vm2 = vmmov %vm4126_vm6 }
 0x281   : > { %vm3476_vm7 = vcmp.lt.s32.totalorder %v4101_v28, 36  ;;  %v1496_v8 = vadd.f32 %v1930_v12, %v3318_v20  ;;  %v1455_v27 = vmul.f32 %v3052_v0, %v1431_v45  ;;  %v1456_v37 = vmul.f32 %v3052_v0, %v1430_v24  ;;  %v1932_v45 = vld [vmem:[%s2317_s16 + $0x60] sm:$0xff] }
 0x282   : > { %v1495_v13 = vadd.f32 %v1931_v30, %v1106_v52  ;;  %vm4105_vm10 = vnez %v4104_v14  ;;  %v1517_v33 = vadd.f32 %v1497_v22, %v1477_v29  ;;  %v1389_v35 = vadd.f32 %v1369_v48, %v1303_v58  ;;  %v1933_v29 = vld [vmem:[%s2317_s16 + $0x78] sm:$0xff]  ;;  %v4121_v14 = vld [vmem:[#allocation26_spill] sm:$0xff] }
 0x283   : > { %v4108_v2 = vsel %vm4105_vm10, %v4106_v54, %v4107_v21  ;;  %v1390_v59 = vadd.f32 %v1370_v55, %v1304_v15  ;;  %v3497_v20 = vmul.f32 %v2909_v19, %v3419_v46  ;;  %v1156_v23 = vrot.slane %v3419_v46, 7  ;;  %v4122_v54 = vld [vmem:[#allocation16_spill] sm:$0xff] }
 0x284   : > { %vm3491_vm13 = vcmp.lt.s32.totalorder %v4108_v2, 36  ;;  %v1242_v52 = vrot.slane %v3419_v46, 6  ;;  %v1328_v6 = vrot.slane %v3419_v46, 5  ;;  %v3505_v17 = vsel %vm3426_vm9, %v3190_v25, 0.0  ;;  %1537 = vst [vmem:[%s3139_s6 + $0x58] sm:$0xff] %v1517_v33  ;;  %vm4113_vm9 = vmmov %vm4094_vm3 }
 0x285   : > { %v1475_v36 = vadd.f32 %v1455_v27, %v1389_v35  ;;  %v1476_v22 = vadd.f32 %v1456_v37, %v1390_v59  ;;  %v1414_v4 = vrot.slane %v3419_v46, 4  ;;  %v1154_v50 = vrot.slane %v3505_v17, 7 }
 0x286   : > { %v1134_v56 = vmul.f32 %v2909_v19, %v3505_v17  ;;  %v1240_v49 = vrot.slane %v3505_v17, 6  ;;  %v1326_v44 = vrot.slane %v3505_v17, 5  ;;  %v1412_v25 = vrot.slane %v3505_v17, 4 }
 0x287   : > { %v1515_v9 = vadd.f32 %v1495_v13, %v1475_v36  ;;  %v1516_v26 = vadd.f32 %v1496_v8, %v1476_v22  ;;  %v1170_v39 = vsel %vm4111_vm11, %v1153_v62, %v1154_v50  ;;  %v3522_v5 = vsel %vm3442_vm0, %v3222_v51, 0.0  ;;  %vm4116_vm0 = vmmov %vm4092_vm4  ;;  %v4119_v13 = vld [vmem:[#allocation25_spill] sm:$0xff] }
 0x288   : > { %v1200_v57 = vmul.f32 %v3011_v47, %v1170_v39  ;;  %v1256_v55 = vsel %vm4112_vm14, %v1239_v53, %v1240_v49  ;;  %v1342_v24 = vsel %vm4113_vm9, %v1325_v11, %v1326_v44  ;;  %v1428_v51 = vsel %vm4114_vm1, %v1411_v7, %v1412_v25  ;;  %vm4118_vm4 = vmmov %vm4114_vm1 }
 0x289   : > { %1535 = vst [vmem:[%s3139_s6 + $0x48] sm:$0xff] %v1515_v9  ;;  %1536 = vst [vmem:[%s3139_s6 + $0x50] sm:$0xff] %v1516_v26  ;;  %v1286_v62 = vmul.f32 %v3016_v63, %v1256_v55  ;;  %v1372_v16 = vmul.f32 %v3024_v32, %v1342_v24  ;;  %v1458_v53 = vmul.f32 %v3052_v0, %v1428_v51  ;;  %v1157_v11 = vrot.slane %v3522_v5, 7  ;;  %v4128_v55 = vld [vmem:[#allocation28_spill] sm:$0xff]  ;;  %v4130_v24 = vld [vmem:[#allocation27_spill] sm:$0xff] }
 0x28a   : > { %v1498_v43 = vadd.f32 %v1932_v45, %v3505_v17  ;;  %v1220_v31 = vadd.f32 %v1200_v57, %v1134_v56  ;;  %v1243_v38 = vrot.slane %v3522_v5, 6  ;;  %v1329_v34 = vrot.slane %v3522_v5, 5  ;;  %v4131_v51 = vld [vmem:[#allocation17_spill] sm:$0xff]  ;;  %vm4135_vm10 = vmmov %vm4116_vm0 }
 0x28b   : > { %v1137_v7 = vmul.f32 %v2909_v19, %v3522_v5  ;;  %v1415_v28 = vrot.slane %v3522_v5, 4  ;;  %v1501_v58 = vadd.f32 %v1933_v29, %v3522_v5  ;;  %v1110_v15 = vsel %vm3476_vm7, %v3237_v1, 0.0  ;;  %vm4137_vm11 = vmmov %vm4113_vm9 }
 0x28c   : > { %v1306_v48 = vadd.f32 %v1286_v62, %v1220_v31  ;;  %v1167_v12 = vsel %vm4115_vm12, %v1156_v23, %v1157_v11  ;;  %v1253_v8 = vsel %vm4116_vm0, %v1242_v52, %v1243_v38  ;;  %v1339_v27 = vsel %vm4117_vm15, %v1328_v6, %v1329_v34  ;;  %vm4138_vm14 = vmmov %vm4113_vm9 }
 0x28d   : > { %v1203_v1 = vmul.f32 %v3011_v47, %v1167_v12  ;;  %v1289_v10 = vmul.f32 %v3016_v63, %v1253_v8  ;;  %v1425_v37 = vsel %vm4118_vm4, %v1414_v4, %v1415_v28  ;;  %v3582_v30 = vsel %vm3491_vm13, %v3273_v42, 0.0  ;;  %vm4136_vm13 = vmmov %vm4116_vm0 }
 0x28e   : > { %vm4120_vm8 = vnez %v4119_v13  ;;  %v1392_v33 = vadd.f32 %v1372_v16, %v1306_v48  ;;  %v1375_v35 = vmul.f32 %v3024_v32, %v1339_v27  ;;  %v1461_v59 = vmul.f32 %v3052_v0, %v1425_v37  ;;  %vm4139_vm9 = vmmov %vm4114_vm1 }
 0x28f   : > { %v4123_v21 = vsel %vm4120_vm8, %v4121_v14, %v4122_v54  ;;  %v1155_v36 = vrot.slane %v1110_v15, 7  ;;  %v1223_v22 = vadd.f32 %v1203_v1, %v1137_v7  ;;  %v1135_v40 = vmul.f32 %v2909_v19, %v1110_v15  ;;  %v1934_v14 = vld [vmem:[%s2317_s16] sm:$0xff]  ;;  %v1935_v54 = vld [vmem:[%s2317_s16 + $0x70] sm:$0xff]  ;;  %vm4147_vm15 = vmmov %vm4127_vm2 }
 0x290   : > { %vm3589_vm3 = vcmp.lt.s32.totalorder %v4123_v21, 36  ;;  %v1241_v42 = vrot.slane %v1110_v15, 6  ;;  %v1327_v56 = vrot.slane %v1110_v15, 5  ;;  %v1478_v9 = vadd.f32 %v1458_v53, %v1392_v33  ;;  %v1936_v33 = vld [vmem:[%s2317_s16 + $0x68] sm:$0xff]  ;;  %vm4148_vm4 = vmmov %vm4135_vm10 }
 0x291   : > { %v1168_v26 = vsel %vm4126_vm6, %v1155_v36, %v1156_v23  ;;  %v1169_v39 = vsel %vm4127_vm2, %v1154_v50, %v1155_v36  ;;  %v1413_v57 = vrot.slane %v1110_v15, 4  ;;  %vm4129_vm5 = vnez %v4128_v55  ;;  %vm4149_vm8 = vmmov %vm4137_vm11 }
 0x292   : > { %v4132_v62 = vsel %vm4129_vm5, %v4130_v24, %v4131_v51  ;;  %v1309_v45 = vadd.f32 %v1289_v10, %v1223_v22  ;;  %v1201_v53 = vmul.f32 %v3011_v47, %v1169_v39  ;;  %v1202_v31 = vmul.f32 %v3011_v47, %v1168_v26  ;;  %vm4151_vm6 = vmmov %vm4127_vm2 }
 0x293   : > { %vm3605_vm7 = vcmp.lt.s32.totalorder %v4132_v62, 36  ;;  %v1254_v23 = vsel %vm4135_vm10, %v1241_v42, %v1242_v52  ;;  %v1518_v7 = vadd.f32 %v1498_v43, %v1478_v9  ;;  %v1255_v50 = vsel %vm4136_vm13, %v1240_v49, %v1241_v42  ;;  %vm4153_vm5 = vmmov %vm4148_vm4 }
 0x294   : > { %v1288_v29 = vmul.f32 %v3016_v63, %v1254_v23  ;;  %v1340_v48 = vsel %vm4137_vm11, %v1327_v56, %v1328_v6  ;;  %v1395_v12 = vadd.f32 %v1375_v35, %v1309_v45  ;;  %v1221_v8 = vadd.f32 %v1201_v53, %v1135_v40  ;;  %v4140_v35 = vld [vmem:[#allocation30_spill] sm:$0xff]  ;;  %vm4156_vm10 = vmmov %vm4149_vm8 }
 0x295   : > { %v1222_v27 = vadd.f32 %v1202_v31, %v3497_v20  ;;  %v1287_v52 = vmul.f32 %v3016_v63, %v1255_v50  ;;  %1538 = vst [vmem:[%s3139_s6 + $0x60] sm:$0xff] %v1518_v7  ;;  %v1341_v49 = vsel %vm4138_vm14, %v1326_v44, %v1327_v56  ;;  %v1374_v43 = vmul.f32 %v3024_v32, %v1340_v48  ;;  %v1937_v48 = vld [vmem:[%s2317_s16 + $0x80] sm:$0xff]  ;;  %vm4158_vm13 = vmmov %vm4149_vm8 }
 0x296   : > { %v1426_v1 = vsel %vm4139_vm9, %v1413_v57, %v1414_v4  ;;  %v1427_v6 = vsel %vm4114_vm1, %v1412_v25, %v1413_v57  ;;  %v1481_v20 = vadd.f32 %v1461_v59, %v1395_v12  ;;  %v1373_v13 = vmul.f32 %v3024_v32, %v1341_v49  ;;  %v4142_v25 = vld [vmem:[#allocation29_spill] sm:$0xff]  ;;  %v4143_v59 = vld [vmem:[#allocation18_spill] sm:$0xff]  ;;  %vm4160_vm11 = vmmov %vm4114_vm1 }
 0x297   : > { %v1307_v10 = vadd.f32 %v1287_v52, %v1221_v8  ;;  %v1308_v37 = vadd.f32 %v1288_v29, %v1222_v27  ;;  %v3637_v44 = vadd.f32 %v1934_v14, %v2980_v60  ;;  %v1500_v21 = vadd.f32 %v1935_v54, %v3419_v46  ;;  %vm4162_vm14 = vmmov %vm4114_vm1 }
 0x298   : > { %v1459_v4 = vmul.f32 %v3052_v0, %v1427_v6  ;;  %v1499_v17 = vadd.f32 %v1936_v33, %v1110_v15  ;;  %vm4141_vm12 = vnez %v4140_v35  ;;  %v1521_v40 = vadd.f32 %v1501_v58, %v1481_v20  ;;  %vm4163_vm9 = vmmov %vm4127_vm2 }
 0x299   : > { %v4144_v36 = vsel %vm4141_vm12, %v4142_v25, %v4143_v59  ;;  %v1393_v42 = vadd.f32 %v1373_v13, %v1307_v10  ;;  %v1394_v56 = vadd.f32 %v1374_v43, %v1308_v37  ;;  %v1460_v9 = vmul.f32 %v3052_v0, %v1426_v1  ;;  %v1938_v43 = vld [vmem:[%s2317_s16 + $0x98] sm:$0xff]  ;;  %vm4165_vm12 = vmmov %vm4148_vm4 }
 0x29a   : > { %vm3648_vm0 = vcmp.lt.s32.totalorder %v4144_v36, 36  ;;  %v3655_v46 = vmul.f32 %v2909_v19, %v3582_v30  ;;  %v1160_v15 = vrot.slane %v3582_v30, 7  ;;  %v1246_v26 = vrot.slane %v3582_v30, 6  ;;  %1541 = vst [vmem:[%s3139_s6 + $0x78] sm:$0xff] %v1521_v40  ;;  %v4159_v40 = vld [vmem:[#allocation31_spill] sm:$0xff] }
 0x29b   : > { %v3662_v39 = vsel %vm3589_vm3, %v3277_v41, 0.0  ;;  %v1479_v57 = vadd.f32 %v1459_v4, %v1393_v42  ;;  %v1480_v58 = vadd.f32 %v1460_v9, %v1394_v56  ;;  %v1332_v55 = vrot.slane %v3582_v30, 5  ;;  %vm4150_vm3 = vmmov %vm4114_vm1 }
 0x29c   : > { %v1158_v24 = vrot.slane %v3662_v39, 7  ;;  %v1138_v51 = vmul.f32 %v2909_v19, %v3662_v39  ;;  %v1244_v62 = vrot.slane %v3662_v39, 6  ;;  %v1330_v45 = vrot.slane %v3662_v39, 5  ;;  %vm4164_vm1 = vmmov %vm4127_vm2 }
 0x29d   : > { %v1416_v41 = vrot.slane %v3662_v39, 4  ;;  %v1519_v2 = vadd.f32 %v1499_v17, %v1479_v57  ;;  %v1520_v53 = vadd.f32 %v1500_v21, %v1480_v58  ;;  %v1116_v23 = vsel %vm3605_vm7, %v3288_v3, 0.0  ;;  %vm4155_vm7 = vmmov %vm4148_vm4 }
 0x29e   : > { %v1166_v31 = vsel %vm4147_vm15, %v1157_v11, %v1158_v24  ;;  %v1252_v50 = vsel %vm4148_vm4, %v1243_v38, %v1244_v62  ;;  %v1338_v11 = vsel %vm4149_vm8, %v1329_v34, %v1330_v45  ;;  %v1418_v16 = vrot.slane %v3582_v30, 4  ;;  %vm4167_vm15 = vmmov %vm4149_vm8 }
 0x29f   : > { %v1204_v7 = vmul.f32 %v3011_v47, %v1166_v31  ;;  %v1424_v3 = vsel %vm4150_vm3, %v1415_v28, %v1416_v41  ;;  %1539 = vst [vmem:[%s3139_s6 + $0x68] sm:$0xff] %v1519_v2  ;;  %1540 = vst [vmem:[%s3139_s6 + $0x70] sm:$0xff] %v1520_v53  ;;  %v1290_v38 = vmul.f32 %v3016_v63, %v1252_v50  ;;  %v1161_v8 = vrot.slane %v1116_v23, 7 }
 0x2a0   : > { %v1376_v29 = vmul.f32 %v3024_v32, %v1338_v11  ;;  %v1502_v12 = vadd.f32 %v1937_v48, %v3662_v39  ;;  %v1247_v27 = vrot.slane %v1116_v23, 6  ;;  %v1333_v52 = vrot.slane %v1116_v23, 5 }
 0x2a1   : > { %v1224_v34 = vadd.f32 %v1204_v7, %v1138_v51  ;;  %v1462_v5 = vmul.f32 %v3052_v0, %v1424_v3  ;;  %v1141_v49 = vmul.f32 %v2909_v19, %v1116_v23  ;;  %v1419_v28 = vrot.slane %v1116_v23, 4 }
 0x2a2   : > { %v1505_v1 = vadd.f32 %v1938_v43, %v1116_v23  ;;  %v1163_v20 = vsel %vm4151_vm6, %v1160_v15, %v1161_v8  ;;  %v4152_v10 = vrot.slane %v2980_v60, 7  ;;  %v1249_v13 = vsel %vm4153_vm5, %v1246_v26, %v1247_v27 }
 0x2a3   : > { %v1310_v6 = vadd.f32 %v1290_v38, %v1224_v34  ;;  %v1207_v54 = vmul.f32 %v3011_v47, %v1163_v20  ;;  %v4154_v21 = vrot.slane %v2980_v60, 6  ;;  %v1114_v33 = vsel %vm3648_vm0, %v3307_v18, 0.0  ;;  %vm4166_vm0 = vmmov %vm4148_vm4 }
 0x2a4   : > { %v1182_v37 = vsel %vm4127_vm2, %v1161_v8, %v4152_v10  ;;  %v1293_v35 = vmul.f32 %v3016_v63, %v1249_v13  ;;  %v1335_v25 = vsel %vm4156_vm10, %v1332_v55, %v1333_v52  ;;  %v4157_v59 = vrot.slane %v2980_v60, 5  ;;  %vm4168_vm4 = vmmov %vm4149_vm8 }
 0x2a5   : > { %v1188_v14 = vmul.f32 %v3011_v47, %v1182_v37  ;;  %v1268_v4 = vsel %vm4155_vm7, %v1247_v27, %v4154_v21  ;;  %v1396_v17 = vadd.f32 %v1376_v29, %v1310_v6  ;;  %v1227_v56 = vadd.f32 %v1207_v54, %v1141_v49  ;;  %vm4169_vm8 = vmmov %vm4150_vm3  ;;  %v1940_v54 = vld [vmem:[%s2317_s16 + $0x88] sm:$0xff] }
 0x2a6   : > { %v1354_v36 = vsel %vm4158_vm13, %v1333_v52, %v4157_v59  ;;  %v1274_v9 = vmul.f32 %v3016_v63, %v1268_v4  ;;  %v1379_v57 = vmul.f32 %v3024_v32, %v1335_v25  ;;  %v1421_v58 = vsel %vm4160_vm11, %v1418_v16, %v1419_v28 }
 0x2a7   : > { %v1208_v42 = vadd.f32 %v1188_v14, %v4159_v40  ;;  %v1360_v18 = vmul.f32 %v3024_v32, %v1354_v36  ;;  %v1482_v22 = vadd.f32 %v1462_v5, %v1396_v17  ;;  %v4161_v51 = vrot.slane %v2980_v60, 4 }
 0x2a8   : > { %v1313_v31 = vadd.f32 %v1293_v35, %v1227_v56  ;;  %v1139_v7 = vmul.f32 %v2909_v19, %v1114_v33  ;;  %v1159_v11 = vrot.slane %v1114_v33, 7  ;;  %v1245_v3 = vrot.slane %v1114_v33, 6 }
 0x2a9   : > { %v1440_v2 = vsel %vm4162_vm14, %v1419_v28, %v4161_v51  ;;  %v1294_v53 = vadd.f32 %v1274_v9, %v1208_v42  ;;  %v1522_v50 = vadd.f32 %v1502_v12, %v1482_v22  ;;  %v1331_v38 = vrot.slane %v1114_v33, 5 }
 0x2aa   : > { %v1446_v23 = vmul.f32 %v3052_v0, %v1440_v2  ;;  %v1399_v48 = vadd.f32 %v1379_v57, %v1313_v31  ;;  %v1465_v34 = vmul.f32 %v3052_v0, %v1421_v58  ;;  %v1417_v8 = vrot.slane %v1114_v33, 4 }
 0x2ab   : > { %v1380_v29 = vadd.f32 %v1360_v18, %v1294_v53  ;;  %1542 = vst [vmem:[%s3139_s6 + $0x80] sm:$0xff] %v1522_v50  ;;  %v1164_v60 = vsel %vm4163_vm9, %v1159_v11, %v1160_v15  ;;  %v1165_v19 = vsel %vm4164_vm1, %v1158_v24, %v1159_v11  ;;  %v1250_v12 = vsel %vm4165_vm12, %v1245_v3, %v1246_v26 }
 0x2ac   : > { %v1251_v27 = vsel %vm4166_vm0, %v1244_v62, %v1245_v3  ;;  %v1485_v5 = vadd.f32 %v1465_v34, %v1399_v48  ;;  %v1205_v15 = vmul.f32 %v3011_v47, %v1165_v19  ;;  %v1206_v49 = vmul.f32 %v3011_v47, %v1164_v60 }
 0x2ad   : > { %v1466_v52 = vadd.f32 %v1446_v23, %v1380_v29  ;;  %v1291_v24 = vmul.f32 %v3016_v63, %v1251_v27  ;;  %v1292_v28 = vmul.f32 %v3016_v63, %v1250_v12  ;;  %v1336_v26 = vsel %vm4167_vm15, %v1331_v38, %v1332_v55 }
 0x2ae   : > { %v1337_v62 = vsel %vm4168_vm4, %v1330_v45, %v1331_v38  ;;  %v1525_v6 = vadd.f32 %v1505_v1, %v1485_v5  ;;  %v1225_v47 = vadd.f32 %v1205_v15, %v1139_v7  ;;  %v1226_v20 = vadd.f32 %v1206_v49, %v3655_v46 }
 0x2af   : > { %v1506_v43 = vadd.f32 %v3637_v44, %v1466_v52  ;;  %v1422_v63 = vsel %vm4169_vm8, %v1417_v8, %v1418_v16  ;;  %v1423_v55 = vsel %vm4150_vm3, %v1416_v41, %v1417_v8  ;;  %v1377_v1 = vmul.f32 %v3024_v32, %v1337_v62  ;;  %v1939_v41 = vld [vmem:[%s2317_s16 + $0x90] sm:$0xff]  ;;  %s2106_s16 = smov [#allocation8]  }
 0x2b0   : > { %1545 = vst [vmem:[%s3139_s6 + $0x98] sm:$0xff] %v1525_v6  ;;  %v1311_v44 = vadd.f32 %v1291_v24, %v1225_v47  ;;  %v1312_v45 = vadd.f32 %v1292_v28, %v1226_v20  ;;  %v1378_v10 = vmul.f32 %v3024_v32, %v1336_v26  ;;  %v1463_v39 = vmul.f32 %v3052_v0, %v1423_v55  ;;  %s2031_s28 = sshll.u32 %s2106_s16, 4  ;;  %s2032_s28 = int_to_ptr.vmem [resolvable:$false] %s2031_s28 }
 0x2b1   : > { %1526 = vst [vmem:[%s3139_s6] sm:$0xff] %v1506_v43  ;;  %v1464_v61 = vmul.f32 %v3052_v0, %v1422_v63  ;;  %v1504_v16 = vadd.f32 %v1939_v41, %v3582_v30  ;;  %v1503_v21 = vadd.f32 %v1940_v54, %v1114_v33  ;;  %s2033_s30 = scalar_lea.vmem %s2032_s28, 5120  ;;  %p2034_p7 = scmp.lt.s32.totalorder %s3810_s24, %s2032_s28 }
 0x2b2   : > { %v1397_v46 = vadd.f32 %v1377_v1, %v1311_v44  ;;  %v1398_v37 = vadd.f32 %v1378_v10, %v1312_v45  ;;  %p2035_p9 = scmp.lt.s32.totalorder %s2033_s30, %s2027_s11 }
 0x2b4   : > { %v1483_v13 = vadd.f32 %v1463_v39, %v1397_v46  ;;  %v1484_v14 = vadd.f32 %v1464_v61, %v1398_v37  ;;  %p2036_p12 = por %p2035_p9, %p2034_p7 }
 0x2b6   : > { %v1523_v32 = vadd.f32 %v1503_v21, %v1483_v13  ;;  %v1524_v4 = vadd.f32 %v1504_v16, %v1484_v14  ;;  %p2037_p2 = pnand %p2036_p12, %p2030_p3 }
 0x2b8   : > { %1543 = vst [vmem:[%s3139_s6 + $0x88] sm:$0xff] %v1523_v32  ;;  %1544 = vst [vmem:[%s3139_s6 + $0x90] sm:$0xff] %v1524_v4 }
 0x2b9   : > { %2040 = shalt.err (!%p2037_p2)
}
 0x2ba   : > { %s2041_s7 = scalar_lea.hbm %s3808_s15, 2560  ;;  %s2045_s12 = scalar_lea.hbm %s3861_s5, 5120 }
 0x2bb   : > { %p2042_p13 = scmp.ne.s32.totalorder %s3808_s15, %s2041_s7  ;;  %p2046_p4 = scmp.lt.u32.totalorder %s3808_s15, %s3861_s5 }
 0x2bc   : > { %p2047_p5 = scmp.lt.u32.totalorder %s2045_s12, %s2041_s7  ;;  %p2049_p11 = scmp.lt.u32.totalorder %s2041_s7, %s3808_s15 }
 0x2bd   : > { %p2043_p6 = pnand %p2042_p13, %p4170_p0 }
 0x2be   : > { %p2048_p8 = por %p2047_p5, %p2046_p4 }
 0x2bf   : > { %p2044_p10 = pneg %p2043_p6 }
 0x2c0   : > { %p2050_p1 = por %p2049_p11, %p2048_p8 }
 0x2c2   : > { %p2051_p3 = pnand %p2050_p1, %p2044_p10 }
 0x2c4   : > { %2054 = shalt.err (!%p2051_p3)
}
 0x2c5   : > { %s2107_s17 = smov 128   ;;  %s2108_s26 = smov 8  }
 0x2c6   : > { %1848 = dma.vmem_to_hbm [thread:$0]  (%p4170_p0), %s3810_s24, 2560, %s3808_s15, %s1547_s9, %s2107_s17, %s2107_s17, %s2108_s26  }
 0x2c7 PF: > { %s1575_s22 = sand.u32 1, %s2085_s18   ;;  %p4171_p7 = scmp.ne.s32.totalorder %s3898_s25, 0 }
 0x2c8   : > { %p4172_p9 = scmp.ge.s32.totalorder %s2097_s21, 2  ;;  %s1576_s11 = scalar_lea.sflag [#allocation4], %s1575_s22 }
 0x2ca   : > { %p1862_p12 = pnand %p4172_p9, %p4171_p7 }
 0x2cc   : > { %2080 = dma.done.wait (!%p1862_p12), %s1576_s11, 2560  }
 0x2cd   : > { %2082 = vsyncadd (!%p1862_p12), %s1576_s11, 4294964736  ;;  %p19_p2 = scmp.ge.s32.totalorder %s2249_s14, 4   ;;  %s4173_s18 = smov %s2089_s19 }
 0x2ce   : > { %s4174_s19 = smov %s2093_s20  ;;  %s4175_s20 = smov %s2265_s27 }
 0x2cf   : > { %s4176_s21 = smov %s2249_s14  ;;  %21 = sbr.rel (!%p19_p2) target bundleno = 6 (0x6), region = 93 }
 0x2d6   :  { %1581 = vsyncpa [#allocation3], 1 }
 0x2d7   :  { %1583 = vsyncpa [#allocation3 + $0x1], 1 }
 0x2d8   :  { %1584 = vsyncpa [#allocation6], 1 }
 0x2d9   :  { %1585 = vsyncpa [#allocation4], 1 }
 0x2da   :  { %1587 = vsyncpa [#allocation4 + $0x1], 1 }

</bundles_post_ra>
